<compile_context>
chip_gen: v5e
topology: v5e:2x2
jax: 0.10.0
libtpu: 0.0.40
codegen_flags: <defaults>
</compile_context>

<pallas_src>
import functools

import jax
import jax.numpy as jnp
from jax import lax
from jax.experimental import pallas as pl
from jax.experimental.pallas import tpu as pltpu


_DEF_BLOCK_BYTES = 2 << 20  # ~2 MiB per stream buffer


def _round_up(x: int, m: int) -> int:
    return (x + m - 1) // m * m


def _round_down(x: int, m: int) -> int:
    return x // m * m


def _crop_rows_kernel(*refs, tile_r, out_tile_r, copy_rows, shift, need_mask):
    """Write output tile i = input rows [start + i*tile_r, ...), zeros past copy_rows."""
    if shift:
        a_ref, b_ref, o_ref = refs
        # The needed window starts `shift` rows into block A and spills `shift`
        # rows into block B.  Both loads are full, tile-aligned DMAs; the
        # re-alignment happens on-chip and hides under the HBM-bound copy.
        data = jnp.concatenate([a_ref[shift:, :], b_ref[:shift, :]], axis=0)
    else:
        a_ref, o_ref = refs
        data = a_ref[...]
    if out_tile_r != tile_r:
        data = data[:out_tile_r, :]
    if need_mask:
        row = (pl.program_id(0) * tile_r
               + lax.broadcasted_iota(jnp.int32, (out_tile_r, 1), 0))
        data = jnp.where(row < copy_rows, data, jnp.zeros_like(data))
    # Single store per output element (no zero-init-then-overwrite).
    o_ref[...] = data


def _crop_rows(x, out_rows, start, copy_rows, *, max_block_bytes=_DEF_BLOCK_BYTES):
    """Return (out_rows, C) array: out[r] = x[start + r] for r < copy_rows, else 0."""
    R, C = x.shape
    dt = x.dtype
    item = dt.itemsize
    assert 0 <= start and 0 <= copy_rows <= out_rows and start + copy_rows <= R

    sub = 8 * max(1, 4 // item)  # sublane pack: 8 (f32) / 16 (bf16) / 32 (int8)

    # Lane (channel) tiling only when one row is bigger than the block budget
    # and a 128-multiple tile is expressible; otherwise keep the full row.
    if C % 128 == 0 and C * item > max_block_bytes:
        tile_c = max(128, _round_down(max_block_bytes // item, 128))
    else:
        tile_c = C
    lane_padded = _round_up(tile_c, 128)  # VMEM footprint is lane-padded

    # Row tiling: biggest tile that keeps double-buffered streams inside the
    # budget (safe on v5e's scoped-VMEM default and v7x's 64 MiB VMEM).
    cap = max(sub, _round_down(max_block_bytes // (lane_padded * item), sub))
    tile_r = max(sub, min(cap, _round_up(out_rows, sub)))

    # The window assembly assumes the input holds at least one full row tile;
    # pad tiny inputs with zeros (cheaper than one block, never in the window).
    if R < tile_r:
        x = jnp.pad(x, ((0, tile_r - R), (0, 0)))
        R = tile_r

    nt = pl.cdiv(out_rows, tile_r)
    nc = pl.cdiv(C, tile_c)
    out_tile_r = tile_r if nt > 1 else out_rows

    s0, shift = divmod(start, tile_r)
    last_blk = (R - 1) // tile_r
    need_mask = copy_rows < out_rows

    def a_map(i, j):
        return (jnp.minimum(s0 + i, last_blk), j)

    in_specs = [pl.BlockSpec((tile_r, tile_c), a_map)]
    operands = (x,)
    if shift:
        def b_map(i, j):
            return (jnp.minimum(s0 + i + 1, last_blk), j)
        in_specs.append(pl.BlockSpec((tile_r, tile_c), b_map))
        operands = (x, x)

    out_spec = pl.BlockSpec((out_tile_r, tile_c), lambda i, j: (i, j))

    kernel = functools.partial(
        _crop_rows_kernel,
        tile_r=tile_r, out_tile_r=out_tile_r,
        copy_rows=copy_rows, shift=shift, need_mask=need_mask)

    blk_bytes = tile_r * lane_padded * item
    est = 2 * (len(in_specs) + 1) * blk_bytes
    vmem_limit = int(min(max(est + (8 << 20), 32 << 20), 56 << 20))

    return pl.pallas_call(
        kernel,
        out_shape=jax.ShapeDtypeStruct((out_rows, C), dt),
        grid=(nt, nc),
        in_specs=in_specs,
        out_specs=out_spec,
        compiler_params=pltpu.CompilerParams(
            dimension_semantics=("parallel", "parallel"),
            vmem_limit_bytes=vmem_limit),
    )(*operands)


def _crop_or_pad_params(length: int, seq_len: int):
    if length > seq_len:
        start = int(length / 2 - seq_len / 2)  # mirrors the PyTorch int() trunc
    else:
        start = 0
    return start, min(length, seq_len)


def _my_crop_1d(x, seq_len, *, max_block_bytes=_DEF_BLOCK_BYTES):
    (L,) = x.shape
    start, copy = _crop_or_pad_params(L, seq_len)
    # Repack the 1-D stream into lane-dense (rows, 128) slabs so every vreg /
    # store is full width (the naive (L, 1) layout uses 1/128 lanes).  The
    # small zero pads below only align the crop start / length to 128 elements
    # and never alias the copied data.
    pad_l = (-start) % 128
    pad_r = (-(L + pad_l)) % 128
    xp = jnp.pad(x, (pad_l, pad_r)) if (pad_l or pad_r) else x
    x2d = xp.reshape(-1, 128)
    out2d = _crop_rows(x2d, pl.cdiv(seq_len, 128), (start + pad_l) // 128,
                       pl.cdiv(copy, 128), max_block_bytes=max_block_bytes)
    out = out2d.reshape(-1)
    return out[:seq_len] if out.shape[0] != seq_len else out


def my_crop(x, seq_len, *, max_block_bytes=_DEF_BLOCK_BYTES):
    """Pallas implementation of MyCrop.forward (center-crop / zero-pad rows)."""
    assert seq_len >= 1
    if x.ndim == 1:
        return _my_crop_1d(x, seq_len, max_block_bytes=max_block_bytes)
    assert x.ndim == 2, "MyCrop expects a 1-D or 2-D input"
    L, C = x.shape
    start, copy = _crop_or_pad_params(L, seq_len)

    # Very narrow channel counts: if the flat element stream is 128-aligned at
    # the crop boundaries, repack to lane-dense (rows, 128) slabs (same trick
    # as the 1-D path) so DMAs and stores run at full vreg width.
    if (C <= 32 and (L * C) % 128 == 0 and (seq_len * C) % 128 == 0
            and (start * C) % 128 == 0):
        out = _crop_rows(x.reshape(-1, 128), seq_len * C // 128,
                         start * C // 128, copy * C // 128,
                         max_block_bytes=max_block_bytes)
        return out.reshape(seq_len, C)
    # TODO(synk): narrow-C inputs whose crop offsets are not 128-element
    # aligned still run with a partially filled lane axis; a fully general
    # repack would additionally need an in-kernel lane rotation (pltpu.roll).
    return _crop_rows(x, seq_len, start, copy, max_block_bytes=max_block_bytes)


def _ref_my_crop(x, seq_len):
    """Plain-JAX reference mirroring the PyTorch module exactly."""
    unsqueezed = False
    if x.ndim == 1:
        unsqueezed = True
        x = x[:, None]
    L, _ = x.shape
    if L > seq_len:
        s = int(L / 2 - seq_len / 2)
        x = x[s:s + seq_len, :]
    if x.shape[0] < seq_len:
        x = jnp.pad(x, ((0, seq_len - x.shape[0]), (0, 0)))
    if unsqueezed:
        x = x[:, 0]
    return x


if __name__ == "__main__":
    key = jax.random.PRNGKey(0)
    ks = jax.random.split(key, 8)

    cases = [
        # 2-D crop, misaligned start, two pipelined row tiles.
        (jax.random.normal(ks[0], (5000, 128), jnp.float32), 4096, {}),
        # Tiny explicit budget: exercises the 2-D (row x lane) grid + dual-block shift.
        (jax.random.normal(ks[1], (260, 512), jnp.float32), 200,
         dict(max_block_bytes=1024)),
        # 2-D crop with a tile-aligned start (single input stream, pure copy).
        (jax.random.normal(ks[2], (768, 128), jnp.float32), 256, {}),
        # 2-D pad case: input smaller than one row tile, zero tail via mask.
        (jax.random.normal(ks[3], (60, 32), jnp.float32), 128, {}),
        # Narrow C (C=4) with 128-aligned crop -> lane-dense flat repack path.
        (jax.random.normal(ks[4], (160, 4), jnp.float32), 96, {}),
        # 1-D crop (unsqueeze path in the reference) -> lane-dense flat path.
        (jax.random.normal(ks[5], (700,), jnp.float32), 300, {}),
        # 1-D pad.
        (jax.random.normal(ks[6], (100,), jnp.float32), 256, {}),
        # bf16 pad case (16-row sublane pack).
        (jax.random.normal(ks[7], (50, 160), jnp.float32).astype(jnp.bfloat16), 64, {}),
    ]

    ok = True
    for x, s, kw in cases:
        out = my_crop(x, s, **kw)
        jax.block_until_ready(out)
        ref = _ref_my_crop(x, s)
        ok &= (out.shape == ref.shape) and (out.dtype == ref.dtype)
        ok &= bool(jnp.array_equal(out, ref))

    print("KERNEL_OK" if ok else "KERNEL_MISMATCH")
</pallas_src>

<mosaic_0001>
module attributes {stable_mosaic.version = 11 : i64} {
  func.func @_crop_rows_kernel(%arg0: i32, %arg1: i32, %arg2: memref<4096x128xf32, #tpu.memory_space<vmem>>, %arg3: memref<4096x128xf32, #tpu.memory_space<vmem>>, %arg4: memref<4096x128xf32, #tpu.memory_space<vmem>>) attributes {dimension_semantics = [#tpu.dimension_semantics<parallel>, #tpu.dimension_semantics<parallel>], iteration_bounds = array<i64: 1, 1>, scalar_prefetch = 0 : i64, scratch_operands = 0 : i64, tpu.core_type = #tpu.core_type<tc>, window_params = [{transform_indices = @transform_0, window_bounds = array<i64: 4096, 128>}, {transform_indices = @transform_1, window_bounds = array<i64: 4096, 128>}, {transform_indices = @transform_2, window_bounds = array<i64: 4096, 128>}]} {
    %c452 = arith.constant 452 : index
    %c0 = arith.constant 0 : index
    %0 = vector.load %arg2[%c452, %c0] : memref<4096x128xf32, #tpu.memory_space<vmem>>, vector<3644x128xf32>
    %c0_0 = arith.constant 0 : index
    %c0_1 = arith.constant 0 : index
    %1 = vector.load %arg3[%c0_0, %c0_1] : memref<4096x128xf32, #tpu.memory_space<vmem>>, vector<452x128xf32>
    %2 = tpu.concatenate %0, %1 in 0 : vector<3644x128xf32>, vector<452x128xf32> -> vector<4096x128xf32>
    %c0_2 = arith.constant 0 : index
    %c0_3 = arith.constant 0 : index
    %3 = vector.load %arg4[%c0_2, %c0_3] : memref<4096x128xf32, #tpu.memory_space<vmem>>, vector<4096x128xf32>
    tpu.vector_store %arg4[%c0_2, %c0_3], %2 {strides = array<i32>} : memref<4096x128xf32, #tpu.memory_space<vmem>>, vector<4096x128xf32>,
    return
  }
  func.func @transform_0(%arg0: i32, %arg1: i32) -> (i32, i32) {
    %c0_i32 = arith.constant 0 : i32
    %0 = arith.addi %c0_i32, %arg0 : i32
    %c1_i32 = arith.constant 1 : i32
    %1 = arith.minsi %0, %c1_i32 : i32
    %c0_i32_0 = arith.constant 0 : i32
    return %1, %arg1 : i32, i32
  }
  func.func @transform_1(%arg0: i32, %arg1: i32) -> (i32, i32) {
    %c0_i32 = arith.constant 0 : i32
    %0 = arith.addi %c0_i32, %arg0 : i32
    %c1_i32 = arith.constant 1 : i32
    %1 = arith.addi %0, %c1_i32 : i32
    %c1_i32_0 = arith.constant 1 : i32
    %2 = arith.minsi %1, %c1_i32_0 : i32
    %c0_i32_1 = arith.constant 0 : i32
    return %2, %arg1 : i32, i32
  }
  func.func @transform_2(%arg0: i32, %arg1: i32) -> (i32, i32) {
    %c0_i32 = arith.constant 0 : i32
    return %arg0, %arg1 : i32, i32
  }
}

</mosaic_0001>

<bundles_post_ra>
// kernel: tpu_custom_call.1
= control target key start
LH: loop header
LB: loop body
LE: loop exit
PB: predicated region body
PF: predicated region fallthrough
CT: control target
= control target key end

     0   :  { %7 = vsyncpa [#allocation3], 0  ;;  %s1519_s0 = inlined_call_operand.hbm [shape: f32[5000,128], index: 0, kind: input, shape index: {}]   ;;  %s1520_s1 = inlined_call_operand.hbm [shape: f32[5000,128], index: 1, kind: input, shape index: {}]   ;;  %s1521_s2 = inlined_call_operand.hbm [shape: f32[4096,128], index: 2, kind: output, shape index: {}]  }
   0x1   :  { %8 = vsyncpa [#allocation6], 0 }
   0x2   :  { %9 = vsyncpa [#allocation4], 0  ;;  %s14_s11 = sshll.u32 %s1519_s0, 4  ;;  %s1424_s12 = smov [#allocation2]   ;;  %s15_s11 = int_to_ptr.hbm [resolvable:$true] %s14_s11 }
   0x3   :  { %s16_s13 = sshll.u32 %s1424_s12, 4  ;;  %s1425_s14 = smov 128   ;;  %s17_s13 = int_to_ptr.vmem [resolvable:$true] %s16_s13 }
   0x4   :  { %s1426_s15 = smov 8  }
   0x5   :  { %22 = dma.hbm_to_vmem [thread:$0]  %s15_s11, 65536, %s17_s13, [#allocation3], %s1425_s14, %s1425_s14, %s1426_s15  }
   0x6   :  { %35 = vsyncadd [#allocation6], 51072  ;;  %s38_s18 = scalar_lea.hbm %s1520_s1, 4096  ;;  %s1427_s20 = smov [#allocation5]  }
   0x7   :  { %s40_s19 = sshll.u32 %s38_s18, 4  ;;  %s42_s21 = sshll.u32 %s1427_s20, 4  ;;  %s41_s19 = int_to_ptr.hbm [resolvable:$true] %s40_s19  ;;  %s43_s21 = int_to_ptr.vmem [resolvable:$true] %s42_s21 }
   0x8   :  { %48 = dma.hbm_to_vmem [thread:$0]  %s41_s19, 14464, %s43_s21, [#allocation6], %s1425_s14, %s1425_s14, %s1426_s15  }
   0x9   :  { %1418 = dma.done.wait [#allocation3], 65536  }
   0xa   :  { %1419 = vsyncadd [#allocation3], 4294901760 }
   0xb   :  { %1420 = dma.done.wait [#allocation6], 65536  }
   0xc   :  { %1421 = vsyncadd [#allocation6], 4294901760  ;;  %v65_v0 = vld [vmem:[#allocation2 + $0x1c4] sm:$0xff]  ;;  %v66_v1 = vld [vmem:[#allocation2 + $0x1cc] sm:$0xff]  ;;  %vm635_vm0 = vcmask 1043456   ;;  %s1428_s0 = smov [#allocation7]  }
   0xd   :  { %v67_v2 = vld [vmem:[#allocation2 + $0x1d4] sm:$0xff]  ;;  %807 = vst [vmem:[#allocation7] sm:$0xff] %v65_v0  ;;  %v68_v3 = vld [vmem:[#allocation2 + $0x1dc] sm:$0xff]  ;;  %v69_v4 = vld [vmem:[#allocation2 + $0x1e4] sm:$0xff]  ;;  %s1323_s1 = sshll.u32 %s1428_s0, 4  ;;  %s1325_s24 = sshll.u32 %s1521_s2, 4  ;;  %s1324_s1 = int_to_ptr.vmem [resolvable:$true] %s1323_s1  ;;  %s1326_s24 = int_to_ptr.hbm [resolvable:$true] %s1325_s24 }
   0xe   :  { %808 = vst [vmem:[#allocation7 + $0x8] sm:$0xff] %v66_v1  ;;  %v70_v5 = vld [vmem:[#allocation2 + $0x1ec] sm:$0xff]  ;;  %v71_v6 = vld [vmem:[#allocation2 + $0x1f4] sm:$0xff]  ;;  %v72_v7 = vld [vmem:[#allocation2 + $0x1fc] sm:$0xff] }
   0xf   :  { %809 = vst [vmem:[#allocation7 + $0x10] sm:$0xff] %v67_v2  ;;  %v73_v8 = vld [vmem:[#allocation2 + $0x204] sm:$0xff]  ;;  %v74_v9 = vld [vmem:[#allocation2 + $0x20c] sm:$0xff]  ;;  %v75_v10 = vld [vmem:[#allocation2 + $0x214] sm:$0xff] }
  0x10   :  { %810 = vst [vmem:[#allocation7 + $0x18] sm:$0xff] %v68_v3  ;;  %v76_v11 = vld [vmem:[#allocation2 + $0x21c] sm:$0xff]  ;;  %v77_v12 = vld [vmem:[#allocation2 + $0x224] sm:$0xff]  ;;  %v78_v13 = vld [vmem:[#allocation2 + $0x22c] sm:$0xff] }
  0x11   :  { %811 = vst [vmem:[#allocation7 + $0x20] sm:$0xff] %v69_v4  ;;  %v79_v14 = vld [vmem:[#allocation2 + $0x234] sm:$0xff]  ;;  %v80_v15 = vld [vmem:[#allocation2 + $0x23c] sm:$0xff]  ;;  %v81_v16 = vld [vmem:[#allocation2 + $0x244] sm:$0xff] }
  0x12   :  { %812 = vst [vmem:[#allocation7 + $0x28] sm:$0xff] %v70_v5  ;;  %v82_v17 = vld [vmem:[#allocation2 + $0x24c] sm:$0xff]  ;;  %v83_v18 = vld [vmem:[#allocation2 + $0x254] sm:$0xff]  ;;  %v84_v19 = vld [vmem:[#allocation2 + $0x25c] sm:$0xff] }
  0x13   :  { %813 = vst [vmem:[#allocation7 + $0x30] sm:$0xff] %v71_v6  ;;  %v85_v20 = vld [vmem:[#allocation2 + $0x264] sm:$0xff]  ;;  %v86_v21 = vld [vmem:[#allocation2 + $0x26c] sm:$0xff]  ;;  %v87_v22 = vld [vmem:[#allocation2 + $0x274] sm:$0xff] }
  0x14   :  { %814 = vst [vmem:[#allocation7 + $0x38] sm:$0xff] %v72_v7  ;;  %v88_v23 = vld [vmem:[#allocation2 + $0x27c] sm:$0xff]  ;;  %v89_v24 = vld [vmem:[#allocation2 + $0x284] sm:$0xff]  ;;  %v90_v25 = vld [vmem:[#allocation2 + $0x28c] sm:$0xff] }
  0x15   :  { %815 = vst [vmem:[#allocation7 + $0x40] sm:$0xff] %v73_v8  ;;  %v91_v26 = vld [vmem:[#allocation2 + $0x294] sm:$0xff]  ;;  %v92_v27 = vld [vmem:[#allocation2 + $0x29c] sm:$0xff]  ;;  %v93_v28 = vld [vmem:[#allocation2 + $0x2a4] sm:$0xff] }
  0x16   :  { %816 = vst [vmem:[#allocation7 + $0x48] sm:$0xff] %v74_v9  ;;  %v94_v29 = vld [vmem:[#allocation2 + $0x2ac] sm:$0xff]  ;;  %v95_v30 = vld [vmem:[#allocation2 + $0x2b4] sm:$0xff]  ;;  %v96_v31 = vld [vmem:[#allocation2 + $0x2bc] sm:$0xff] }
  0x17   :  { %817 = vst [vmem:[#allocation7 + $0x50] sm:$0xff] %v75_v10  ;;  %v97_v32 = vld [vmem:[#allocation2 + $0x2c4] sm:$0xff]  ;;  %v98_v33 = vld [vmem:[#allocation2 + $0x2cc] sm:$0xff]  ;;  %v99_v34 = vld [vmem:[#allocation2 + $0x2d4] sm:$0xff] }
  0x18   :  { %818 = vst [vmem:[#allocation7 + $0x58] sm:$0xff] %v76_v11  ;;  %v100_v35 = vld [vmem:[#allocation2 + $0x2dc] sm:$0xff]  ;;  %v101_v36 = vld [vmem:[#allocation2 + $0x2e4] sm:$0xff]  ;;  %v102_v37 = vld [vmem:[#allocation2 + $0x2ec] sm:$0xff] }
  0x19   :  { %819 = vst [vmem:[#allocation7 + $0x60] sm:$0xff] %v77_v12  ;;  %v103_v38 = vld [vmem:[#allocation2 + $0x2f4] sm:$0xff]  ;;  %v104_v39 = vld [vmem:[#allocation2 + $0x2fc] sm:$0xff]  ;;  %v105_v40 = vld [vmem:[#allocation2 + $0x304] sm:$0xff] }
  0x1a   :  { %820 = vst [vmem:[#allocation7 + $0x68] sm:$0xff] %v78_v13  ;;  %v106_v41 = vld [vmem:[#allocation2 + $0x30c] sm:$0xff]  ;;  %v107_v42 = vld [vmem:[#allocation2 + $0x314] sm:$0xff]  ;;  %v108_v43 = vld [vmem:[#allocation2 + $0x31c] sm:$0xff] }
  0x1b   :  { %821 = vst [vmem:[#allocation7 + $0x70] sm:$0xff] %v79_v14  ;;  %v109_v44 = vld [vmem:[#allocation2 + $0x324] sm:$0xff]  ;;  %v110_v45 = vld [vmem:[#allocation2 + $0x32c] sm:$0xff]  ;;  %v111_v46 = vld [vmem:[#allocation2 + $0x334] sm:$0xff] }
  0x1c   :  { %822 = vst [vmem:[#allocation7 + $0x78] sm:$0xff] %v80_v15  ;;  %v112_v47 = vld [vmem:[#allocation2 + $0x33c] sm:$0xff]  ;;  %v113_v48 = vld [vmem:[#allocation2 + $0x344] sm:$0xff]  ;;  %v114_v49 = vld [vmem:[#allocation2 + $0x34c] sm:$0xff] }
  0x1d   :  { %823 = vst [vmem:[#allocation7 + $0x80] sm:$0xff] %v81_v16  ;;  %v115_v50 = vld [vmem:[#allocation2 + $0x354] sm:$0xff]  ;;  %v116_v51 = vld [vmem:[#allocation2 + $0x35c] sm:$0xff]  ;;  %v117_v52 = vld [vmem:[#allocation2 + $0x364] sm:$0xff] }
  0x1e   :  { %824 = vst [vmem:[#allocation7 + $0x88] sm:$0xff] %v82_v17  ;;  %v118_v53 = vld [vmem:[#allocation2 + $0x36c] sm:$0xff]  ;;  %v119_v54 = vld [vmem:[#allocation2 + $0x374] sm:$0xff]  ;;  %v120_v55 = vld [vmem:[#allocation2 + $0x37c] sm:$0xff] }
  0x1f   :  { %825 = vst [vmem:[#allocation7 + $0x90] sm:$0xff] %v83_v18  ;;  %v121_v56 = vld [vmem:[#allocation2 + $0x384] sm:$0xff]  ;;  %v122_v57 = vld [vmem:[#allocation2 + $0x38c] sm:$0xff]  ;;  %v123_v58 = vld [vmem:[#allocation2 + $0x394] sm:$0xff] }
  0x20   :  { %826 = vst [vmem:[#allocation7 + $0x98] sm:$0xff] %v84_v19  ;;  %v124_v59 = vld [vmem:[#allocation2 + $0x39c] sm:$0xff]  ;;  %v125_v60 = vld [vmem:[#allocation2 + $0x3a4] sm:$0xff]  ;;  %v126_v61 = vld [vmem:[#allocation2 + $0x3ac] sm:$0xff] }
  0x21   :  { %827 = vst [vmem:[#allocation7 + $0xa0] sm:$0xff] %v85_v20  ;;  %v127_v62 = vld [vmem:[#allocation2 + $0x3b4] sm:$0xff]  ;;  %v128_v63 = vld [vmem:[#allocation2 + $0x3bc] sm:$0xff]  ;;  %v129_v0 = vld [vmem:[#allocation2 + $0x3c4] sm:$0xff] }
  0x22   :  { %828 = vst [vmem:[#allocation7 + $0xa8] sm:$0xff] %v86_v21  ;;  %v130_v1 = vld [vmem:[#allocation2 + $0x3cc] sm:$0xff]  ;;  %v131_v2 = vld [vmem:[#allocation2 + $0x3d4] sm:$0xff]  ;;  %v132_v3 = vld [vmem:[#allocation2 + $0x3dc] sm:$0xff] }
  0x23   :  { %829 = vst [vmem:[#allocation7 + $0xb0] sm:$0xff] %v87_v22  ;;  %v133_v4 = vld [vmem:[#allocation2 + $0x3e4] sm:$0xff]  ;;  %v134_v5 = vld [vmem:[#allocation2 + $0x3ec] sm:$0xff]  ;;  %v135_v6 = vld [vmem:[#allocation2 + $0x3f4] sm:$0xff] }
  0x24   :  { %830 = vst [vmem:[#allocation7 + $0xb8] sm:$0xff] %v88_v23  ;;  %v136_v7 = vld [vmem:[#allocation2 + $0x3fc] sm:$0xff]  ;;  %v137_v8 = vld [vmem:[#allocation2 + $0x404] sm:$0xff]  ;;  %v138_v9 = vld [vmem:[#allocation2 + $0x40c] sm:$0xff] }
  0x25   :  { %831 = vst [vmem:[#allocation7 + $0xc0] sm:$0xff] %v89_v24  ;;  %v139_v10 = vld [vmem:[#allocation2 + $0x414] sm:$0xff]  ;;  %v140_v11 = vld [vmem:[#allocation2 + $0x41c] sm:$0xff]  ;;  %v141_v12 = vld [vmem:[#allocation2 + $0x424] sm:$0xff] }
  0x26   :  { %832 = vst [vmem:[#allocation7 + $0xc8] sm:$0xff] %v90_v25  ;;  %v142_v13 = vld [vmem:[#allocation2 + $0x42c] sm:$0xff]  ;;  %v143_v14 = vld [vmem:[#allocation2 + $0x434] sm:$0xff]  ;;  %v144_v15 = vld [vmem:[#allocation2 + $0x43c] sm:$0xff] }
  0x27   :  { %833 = vst [vmem:[#allocation7 + $0xd0] sm:$0xff] %v91_v26  ;;  %v145_v16 = vld [vmem:[#allocation2 + $0x444] sm:$0xff]  ;;  %v146_v17 = vld [vmem:[#allocation2 + $0x44c] sm:$0xff]  ;;  %v147_v18 = vld [vmem:[#allocation2 + $0x454] sm:$0xff] }
  0x28   :  { %834 = vst [vmem:[#allocation7 + $0xd8] sm:$0xff] %v92_v27  ;;  %v148_v19 = vld [vmem:[#allocation2 + $0x45c] sm:$0xff]  ;;  %v149_v20 = vld [vmem:[#allocation2 + $0x464] sm:$0xff]  ;;  %v150_v21 = vld [vmem:[#allocation2 + $0x46c] sm:$0xff] }
  0x29   :  { %835 = vst [vmem:[#allocation7 + $0xe0] sm:$0xff] %v93_v28  ;;  %v151_v22 = vld [vmem:[#allocation2 + $0x474] sm:$0xff]  ;;  %v152_v23 = vld [vmem:[#allocation2 + $0x47c] sm:$0xff]  ;;  %v153_v24 = vld [vmem:[#allocation2 + $0x484] sm:$0xff] }
  0x2a   :  { %836 = vst [vmem:[#allocation7 + $0xe8] sm:$0xff] %v94_v29  ;;  %v154_v25 = vld [vmem:[#allocation2 + $0x48c] sm:$0xff]  ;;  %v155_v26 = vld [vmem:[#allocation2 + $0x494] sm:$0xff]  ;;  %v156_v27 = vld [vmem:[#allocation2 + $0x49c] sm:$0xff] }
  0x2b   :  { %837 = vst [vmem:[#allocation7 + $0xf0] sm:$0xff] %v95_v30  ;;  %v157_v28 = vld [vmem:[#allocation2 + $0x4a4] sm:$0xff]  ;;  %v158_v29 = vld [vmem:[#allocation2 + $0x4ac] sm:$0xff]  ;;  %v159_v30 = vld [vmem:[#allocation2 + $0x4b4] sm:$0xff] }
  0x2c   :  { %838 = vst [vmem:[#allocation7 + $0xf8] sm:$0xff] %v96_v31  ;;  %v160_v31 = vld [vmem:[#allocation2 + $0x4bc] sm:$0xff] }
  0x2d   :  { %839 = vst [vmem:[#allocation7 + $0x100] sm:$0xff] %v97_v32  ;;  %v161_v32 = vld [vmem:[#allocation2 + $0x4c4] sm:$0xff] }
  0x2e   :  { %840 = vst [vmem:[#allocation7 + $0x108] sm:$0xff] %v98_v33  ;;  %v162_v33 = vld [vmem:[#allocation2 + $0x4cc] sm:$0xff] }
  0x2f   :  { %841 = vst [vmem:[#allocation7 + $0x110] sm:$0xff] %v99_v34  ;;  %v163_v34 = vld [vmem:[#allocation2 + $0x4d4] sm:$0xff] }
  0x30   :  { %842 = vst [vmem:[#allocation7 + $0x118] sm:$0xff] %v100_v35  ;;  %v164_v35 = vld [vmem:[#allocation2 + $0x4dc] sm:$0xff] }
  0x31   :  { %843 = vst [vmem:[#allocation7 + $0x120] sm:$0xff] %v101_v36  ;;  %v165_v36 = vld [vmem:[#allocation2 + $0x4e4] sm:$0xff] }
  0x32   :  { %844 = vst [vmem:[#allocation7 + $0x128] sm:$0xff] %v102_v37  ;;  %v166_v37 = vld [vmem:[#allocation2 + $0x4ec] sm:$0xff] }
  0x33   :  { %845 = vst [vmem:[#allocation7 + $0x130] sm:$0xff] %v103_v38  ;;  %v167_v38 = vld [vmem:[#allocation2 + $0x4f4] sm:$0xff] }
  0x34   :  { %846 = vst [vmem:[#allocation7 + $0x138] sm:$0xff] %v104_v39  ;;  %v168_v39 = vld [vmem:[#allocation2 + $0x4fc] sm:$0xff] }
  0x35   :  { %847 = vst [vmem:[#allocation7 + $0x140] sm:$0xff] %v105_v40  ;;  %v169_v40 = vld [vmem:[#allocation2 + $0x504] sm:$0xff] }
  0x36   :  { %848 = vst [vmem:[#allocation7 + $0x148] sm:$0xff] %v106_v41  ;;  %v170_v41 = vld [vmem:[#allocation2 + $0x50c] sm:$0xff] }
  0x37   :  { %849 = vst [vmem:[#allocation7 + $0x150] sm:$0xff] %v107_v42  ;;  %v171_v42 = vld [vmem:[#allocation2 + $0x514] sm:$0xff] }
  0x38   :  { %850 = vst [vmem:[#allocation7 + $0x158] sm:$0xff] %v108_v43  ;;  %v172_v43 = vld [vmem:[#allocation2 + $0x51c] sm:$0xff] }
  0x39   :  { %851 = vst [vmem:[#allocation7 + $0x160] sm:$0xff] %v109_v44  ;;  %v173_v44 = vld [vmem:[#allocation2 + $0x524] sm:$0xff] }
  0x3a   :  { %852 = vst [vmem:[#allocation7 + $0x168] sm:$0xff] %v110_v45  ;;  %v174_v45 = vld [vmem:[#allocation2 + $0x52c] sm:$0xff] }
  0x3b   :  { %853 = vst [vmem:[#allocation7 + $0x170] sm:$0xff] %v111_v46  ;;  %v175_v46 = vld [vmem:[#allocation2 + $0x534] sm:$0xff] }
  0x3c   :  { %854 = vst [vmem:[#allocation7 + $0x178] sm:$0xff] %v112_v47  ;;  %v176_v47 = vld [vmem:[#allocation2 + $0x53c] sm:$0xff] }
  0x3d   :  { %855 = vst [vmem:[#allocation7 + $0x180] sm:$0xff] %v113_v48  ;;  %v177_v48 = vld [vmem:[#allocation2 + $0x544] sm:$0xff] }
  0x3e   :  { %856 = vst [vmem:[#allocation7 + $0x188] sm:$0xff] %v114_v49  ;;  %v178_v49 = vld [vmem:[#allocation2 + $0x54c] sm:$0xff] }
  0x3f   :  { %857 = vst [vmem:[#allocation7 + $0x190] sm:$0xff] %v115_v50  ;;  %v179_v50 = vld [vmem:[#allocation2 + $0x554] sm:$0xff] }
  0x40   :  { %858 = vst [vmem:[#allocation7 + $0x198] sm:$0xff] %v116_v51  ;;  %v180_v51 = vld [vmem:[#allocation2 + $0x55c] sm:$0xff] }
  0x41   :  { %859 = vst [vmem:[#allocation7 + $0x1a0] sm:$0xff] %v117_v52  ;;  %v181_v52 = vld [vmem:[#allocation2 + $0x564] sm:$0xff] }
  0x42   :  { %860 = vst [vmem:[#allocation7 + $0x1a8] sm:$0xff] %v118_v53  ;;  %v182_v53 = vld [vmem:[#allocation2 + $0x56c] sm:$0xff] }
  0x43   :  { %861 = vst [vmem:[#allocation7 + $0x1b0] sm:$0xff] %v119_v54  ;;  %v183_v54 = vld [vmem:[#allocation2 + $0x574] sm:$0xff] }
  0x44   :  { %862 = vst [vmem:[#allocation7 + $0x1b8] sm:$0xff] %v120_v55  ;;  %v184_v55 = vld [vmem:[#allocation2 + $0x57c] sm:$0xff] }
  0x45   :  { %863 = vst [vmem:[#allocation7 + $0x1c0] sm:$0xff] %v121_v56  ;;  %v185_v56 = vld [vmem:[#allocation2 + $0x584] sm:$0xff] }
  0x46   :  { %864 = vst [vmem:[#allocation7 + $0x1c8] sm:$0xff] %v122_v57  ;;  %v186_v57 = vld [vmem:[#allocation2 + $0x58c] sm:$0xff] }
  0x47   :  { %865 = vst [vmem:[#allocation7 + $0x1d0] sm:$0xff] %v123_v58  ;;  %v187_v58 = vld [vmem:[#allocation2 + $0x594] sm:$0xff] }
  0x48   :  { %866 = vst [vmem:[#allocation7 + $0x1d8] sm:$0xff] %v124_v59  ;;  %v188_v59 = vld [vmem:[#allocation2 + $0x59c] sm:$0xff] }
  0x49   :  { %867 = vst [vmem:[#allocation7 + $0x1e0] sm:$0xff] %v125_v60  ;;  %v189_v60 = vld [vmem:[#allocation2 + $0x5a4] sm:$0xff] }
  0x4a   :  { %868 = vst [vmem:[#allocation7 + $0x1e8] sm:$0xff] %v126_v61  ;;  %v190_v61 = vld [vmem:[#allocation2 + $0x5ac] sm:$0xff] }
  0x4b   :  { %869 = vst [vmem:[#allocation7 + $0x1f0] sm:$0xff] %v127_v62  ;;  %v191_v62 = vld [vmem:[#allocation2 + $0x5b4] sm:$0xff] }
  0x4c   :  { %870 = vst [vmem:[#allocation7 + $0x1f8] sm:$0xff] %v128_v63  ;;  %v192_v63 = vld [vmem:[#allocation2 + $0x5bc] sm:$0xff] }
  0x4d   :  { %871 = vst [vmem:[#allocation7 + $0x200] sm:$0xff] %v129_v0  ;;  %v193_v0 = vld [vmem:[#allocation2 + $0x5c4] sm:$0xff] }
  0x4e   :  { %872 = vst [vmem:[#allocation7 + $0x208] sm:$0xff] %v130_v1  ;;  %v194_v1 = vld [vmem:[#allocation2 + $0x5cc] sm:$0xff] }
  0x4f   :  { %873 = vst [vmem:[#allocation7 + $0x210] sm:$0xff] %v131_v2  ;;  %v195_v2 = vld [vmem:[#allocation2 + $0x5d4] sm:$0xff] }
  0x50   :  { %874 = vst [vmem:[#allocation7 + $0x218] sm:$0xff] %v132_v3  ;;  %v196_v3 = vld [vmem:[#allocation2 + $0x5dc] sm:$0xff] }
  0x51   :  { %875 = vst [vmem:[#allocation7 + $0x220] sm:$0xff] %v133_v4  ;;  %v197_v4 = vld [vmem:[#allocation2 + $0x5e4] sm:$0xff] }
  0x52   :  { %876 = vst [vmem:[#allocation7 + $0x228] sm:$0xff] %v134_v5  ;;  %v198_v5 = vld [vmem:[#allocation2 + $0x5ec] sm:$0xff] }
  0x53   :  { %877 = vst [vmem:[#allocation7 + $0x230] sm:$0xff] %v135_v6  ;;  %v199_v6 = vld [vmem:[#allocation2 + $0x5f4] sm:$0xff] }
  0x54   :  { %878 = vst [vmem:[#allocation7 + $0x238] sm:$0xff] %v136_v7  ;;  %v200_v7 = vld [vmem:[#allocation2 + $0x5fc] sm:$0xff] }
  0x55   :  { %879 = vst [vmem:[#allocation7 + $0x240] sm:$0xff] %v137_v8  ;;  %v201_v8 = vld [vmem:[#allocation2 + $0x604] sm:$0xff] }
  0x56   :  { %880 = vst [vmem:[#allocation7 + $0x248] sm:$0xff] %v138_v9  ;;  %v202_v9 = vld [vmem:[#allocation2 + $0x60c] sm:$0xff] }
  0x57   :  { %881 = vst [vmem:[#allocation7 + $0x250] sm:$0xff] %v139_v10  ;;  %v203_v10 = vld [vmem:[#allocation2 + $0x614] sm:$0xff] }
  0x58   :  { %882 = vst [vmem:[#allocation7 + $0x258] sm:$0xff] %v140_v11  ;;  %v204_v11 = vld [vmem:[#allocation2 + $0x61c] sm:$0xff] }
  0x59   :  { %883 = vst [vmem:[#allocation7 + $0x260] sm:$0xff] %v141_v12  ;;  %v205_v12 = vld [vmem:[#allocation2 + $0x624] sm:$0xff] }
  0x5a   :  { %884 = vst [vmem:[#allocation7 + $0x268] sm:$0xff] %v142_v13  ;;  %v206_v13 = vld [vmem:[#allocation2 + $0x62c] sm:$0xff] }
  0x5b   :  { %885 = vst [vmem:[#allocation7 + $0x270] sm:$0xff] %v143_v14  ;;  %v207_v14 = vld [vmem:[#allocation2 + $0x634] sm:$0xff] }
  0x5c   :  { %886 = vst [vmem:[#allocation7 + $0x278] sm:$0xff] %v144_v15  ;;  %v208_v15 = vld [vmem:[#allocation2 + $0x63c] sm:$0xff] }
  0x5d   :  { %887 = vst [vmem:[#allocation7 + $0x280] sm:$0xff] %v145_v16  ;;  %v209_v16 = vld [vmem:[#allocation2 + $0x644] sm:$0xff] }
  0x5e   :  { %888 = vst [vmem:[#allocation7 + $0x288] sm:$0xff] %v146_v17  ;;  %v210_v17 = vld [vmem:[#allocation2 + $0x64c] sm:$0xff] }
  0x5f   :  { %889 = vst [vmem:[#allocation7 + $0x290] sm:$0xff] %v147_v18  ;;  %v211_v18 = vld [vmem:[#allocation2 + $0x654] sm:$0xff] }
  0x60   :  { %890 = vst [vmem:[#allocation7 + $0x298] sm:$0xff] %v148_v19  ;;  %v212_v19 = vld [vmem:[#allocation2 + $0x65c] sm:$0xff] }
  0x61   :  { %891 = vst [vmem:[#allocation7 + $0x2a0] sm:$0xff] %v149_v20  ;;  %v213_v20 = vld [vmem:[#allocation2 + $0x664] sm:$0xff] }
  0x62   :  { %892 = vst [vmem:[#allocation7 + $0x2a8] sm:$0xff] %v150_v21  ;;  %v214_v21 = vld [vmem:[#allocation2 + $0x66c] sm:$0xff] }
  0x63   :  { %893 = vst [vmem:[#allocation7 + $0x2b0] sm:$0xff] %v151_v22  ;;  %v215_v22 = vld [vmem:[#allocation2 + $0x674] sm:$0xff] }
  0x64   :  { %894 = vst [vmem:[#allocation7 + $0x2b8] sm:$0xff] %v152_v23  ;;  %v216_v23 = vld [vmem:[#allocation2 + $0x67c] sm:$0xff] }
  0x65   :  { %895 = vst [vmem:[#allocation7 + $0x2c0] sm:$0xff] %v153_v24  ;;  %v217_v24 = vld [vmem:[#allocation2 + $0x684] sm:$0xff] }
  0x66   :  { %896 = vst [vmem:[#allocation7 + $0x2c8] sm:$0xff] %v154_v25  ;;  %v218_v25 = vld [vmem:[#allocation2 + $0x68c] sm:$0xff] }
  0x67   :  { %897 = vst [vmem:[#allocation7 + $0x2d0] sm:$0xff] %v155_v26  ;;  %v219_v26 = vld [vmem:[#allocation2 + $0x694] sm:$0xff] }
  0x68   :  { %898 = vst [vmem:[#allocation7 + $0x2d8] sm:$0xff] %v156_v27  ;;  %v220_v27 = vld [vmem:[#allocation2 + $0x69c] sm:$0xff] }
  0x69   :  { %899 = vst [vmem:[#allocation7 + $0x2e0] sm:$0xff] %v157_v28  ;;  %v221_v28 = vld [vmem:[#allocation2 + $0x6a4] sm:$0xff] }
  0x6a   :  { %900 = vst [vmem:[#allocation7 + $0x2e8] sm:$0xff] %v158_v29  ;;  %v222_v29 = vld [vmem:[#allocation2 + $0x6ac] sm:$0xff] }
  0x6b   :  { %901 = vst [vmem:[#allocation7 + $0x2f0] sm:$0xff] %v159_v30  ;;  %v223_v30 = vld [vmem:[#allocation2 + $0x6b4] sm:$0xff] }
  0x6c   :  { %902 = vst [vmem:[#allocation7 + $0x2f8] sm:$0xff] %v160_v31  ;;  %v224_v31 = vld [vmem:[#allocation2 + $0x6bc] sm:$0xff] }
  0x6d   :  { %903 = vst [vmem:[#allocation7 + $0x300] sm:$0xff] %v161_v32  ;;  %v225_v32 = vld [vmem:[#allocation2 + $0x6c4] sm:$0xff] }
  0x6e   :  { %904 = vst [vmem:[#allocation7 + $0x308] sm:$0xff] %v162_v33  ;;  %v226_v33 = vld [vmem:[#allocation2 + $0x6cc] sm:$0xff] }
  0x6f   :  { %905 = vst [vmem:[#allocation7 + $0x310] sm:$0xff] %v163_v34  ;;  %v227_v34 = vld [vmem:[#allocation2 + $0x6d4] sm:$0xff] }
  0x70   :  { %906 = vst [vmem:[#allocation7 + $0x318] sm:$0xff] %v164_v35  ;;  %v228_v35 = vld [vmem:[#allocation2 + $0x6dc] sm:$0xff] }
  0x71   :  { %907 = vst [vmem:[#allocation7 + $0x320] sm:$0xff] %v165_v36  ;;  %v229_v36 = vld [vmem:[#allocation2 + $0x6e4] sm:$0xff] }
  0x72   :  { %908 = vst [vmem:[#allocation7 + $0x328] sm:$0xff] %v166_v37  ;;  %v230_v37 = vld [vmem:[#allocation2 + $0x6ec] sm:$0xff] }
  0x73   :  { %909 = vst [vmem:[#allocation7 + $0x330] sm:$0xff] %v167_v38  ;;  %v231_v38 = vld [vmem:[#allocation2 + $0x6f4] sm:$0xff] }
  0x74   :  { %910 = vst [vmem:[#allocation7 + $0x338] sm:$0xff] %v168_v39  ;;  %v232_v39 = vld [vmem:[#allocation2 + $0x6fc] sm:$0xff] }
  0x75   :  { %911 = vst [vmem:[#allocation7 + $0x340] sm:$0xff] %v169_v40  ;;  %v233_v40 = vld [vmem:[#allocation2 + $0x704] sm:$0xff] }
  0x76   :  { %912 = vst [vmem:[#allocation7 + $0x348] sm:$0xff] %v170_v41  ;;  %v234_v41 = vld [vmem:[#allocation2 + $0x70c] sm:$0xff] }
  0x77   :  { %913 = vst [vmem:[#allocation7 + $0x350] sm:$0xff] %v171_v42  ;;  %v235_v42 = vld [vmem:[#allocation2 + $0x714] sm:$0xff] }
  0x78   :  { %914 = vst [vmem:[#allocation7 + $0x358] sm:$0xff] %v172_v43  ;;  %v236_v43 = vld [vmem:[#allocation2 + $0x71c] sm:$0xff] }
  0x79   :  { %915 = vst [vmem:[#allocation7 + $0x360] sm:$0xff] %v173_v44  ;;  %v237_v44 = vld [vmem:[#allocation2 + $0x724] sm:$0xff] }
  0x7a   :  { %916 = vst [vmem:[#allocation7 + $0x368] sm:$0xff] %v174_v45  ;;  %v238_v45 = vld [vmem:[#allocation2 + $0x72c] sm:$0xff] }
  0x7b   :  { %917 = vst [vmem:[#allocation7 + $0x370] sm:$0xff] %v175_v46  ;;  %v239_v46 = vld [vmem:[#allocation2 + $0x734] sm:$0xff] }
  0x7c   :  { %918 = vst [vmem:[#allocation7 + $0x378] sm:$0xff] %v176_v47  ;;  %v240_v47 = vld [vmem:[#allocation2 + $0x73c] sm:$0xff] }
  0x7d   :  { %919 = vst [vmem:[#allocation7 + $0x380] sm:$0xff] %v177_v48  ;;  %v241_v48 = vld [vmem:[#allocation2 + $0x744] sm:$0xff] }
  0x7e   :  { %920 = vst [vmem:[#allocation7 + $0x388] sm:$0xff] %v178_v49  ;;  %v242_v49 = vld [vmem:[#allocation2 + $0x74c] sm:$0xff] }
  0x7f   :  { %921 = vst [vmem:[#allocation7 + $0x390] sm:$0xff] %v179_v50  ;;  %v243_v50 = vld [vmem:[#allocation2 + $0x754] sm:$0xff] }
  0x80   :  { %922 = vst [vmem:[#allocation7 + $0x398] sm:$0xff] %v180_v51  ;;  %v244_v51 = vld [vmem:[#allocation2 + $0x75c] sm:$0xff] }
  0x81   :  { %923 = vst [vmem:[#allocation7 + $0x3a0] sm:$0xff] %v181_v52  ;;  %v245_v52 = vld [vmem:[#allocation2 + $0x764] sm:$0xff] }
  0x82   :  { %924 = vst [vmem:[#allocation7 + $0x3a8] sm:$0xff] %v182_v53  ;;  %v246_v53 = vld [vmem:[#allocation2 + $0x76c] sm:$0xff] }
  0x83   :  { %925 = vst [vmem:[#allocation7 + $0x3b0] sm:$0xff] %v183_v54  ;;  %v247_v54 = vld [vmem:[#allocation2 + $0x774] sm:$0xff] }
  0x84   :  { %926 = vst [vmem:[#allocation7 + $0x3b8] sm:$0xff] %v184_v55  ;;  %v248_v55 = vld [vmem:[#allocation2 + $0x77c] sm:$0xff] }
  0x85   :  { %927 = vst [vmem:[#allocation7 + $0x3c0] sm:$0xff] %v185_v56  ;;  %v249_v56 = vld [vmem:[#allocation2 + $0x784] sm:$0xff] }
  0x86   :  { %928 = vst [vmem:[#allocation7 + $0x3c8] sm:$0xff] %v186_v57  ;;  %v250_v57 = vld [vmem:[#allocation2 + $0x78c] sm:$0xff] }
  0x87   :  { %929 = vst [vmem:[#allocation7 + $0x3d0] sm:$0xff] %v187_v58  ;;  %v251_v58 = vld [vmem:[#allocation2 + $0x794] sm:$0xff] }
  0x88   :  { %930 = vst [vmem:[#allocation7 + $0x3d8] sm:$0xff] %v188_v59  ;;  %v252_v59 = vld [vmem:[#allocation2 + $0x79c] sm:$0xff] }
  0x89   :  { %931 = vst [vmem:[#allocation7 + $0x3e0] sm:$0xff] %v189_v60  ;;  %v253_v60 = vld [vmem:[#allocation2 + $0x7a4] sm:$0xff] }
  0x8a   :  { %932 = vst [vmem:[#allocation7 + $0x3e8] sm:$0xff] %v190_v61  ;;  %v254_v61 = vld [vmem:[#allocation2 + $0x7ac] sm:$0xff] }
  0x8b   :  { %933 = vst [vmem:[#allocation7 + $0x3f0] sm:$0xff] %v191_v62  ;;  %v255_v62 = vld [vmem:[#allocation2 + $0x7b4] sm:$0xff] }
  0x8c   :  { %934 = vst [vmem:[#allocation7 + $0x3f8] sm:$0xff] %v192_v63  ;;  %v256_v63 = vld [vmem:[#allocation2 + $0x7bc] sm:$0xff] }
  0x8d   :  { %935 = vst [vmem:[#allocation7 + $0x400] sm:$0xff] %v193_v0  ;;  %v257_v0 = vld [vmem:[#allocation2 + $0x7c4] sm:$0xff] }
  0x8e   :  { %936 = vst [vmem:[#allocation7 + $0x408] sm:$0xff] %v194_v1  ;;  %v258_v1 = vld [vmem:[#allocation2 + $0x7cc] sm:$0xff] }
  0x8f   :  { %937 = vst [vmem:[#allocation7 + $0x410] sm:$0xff] %v195_v2  ;;  %v259_v2 = vld [vmem:[#allocation2 + $0x7d4] sm:$0xff] }
  0x90   :  { %938 = vst [vmem:[#allocation7 + $0x418] sm:$0xff] %v196_v3  ;;  %v260_v3 = vld [vmem:[#allocation2 + $0x7dc] sm:$0xff] }
  0x91   :  { %939 = vst [vmem:[#allocation7 + $0x420] sm:$0xff] %v197_v4  ;;  %v261_v4 = vld [vmem:[#allocation2 + $0x7e4] sm:$0xff] }
  0x92   :  { %940 = vst [vmem:[#allocation7 + $0x428] sm:$0xff] %v198_v5  ;;  %v262_v5 = vld [vmem:[#allocation2 + $0x7ec] sm:$0xff] }
  0x93   :  { %941 = vst [vmem:[#allocation7 + $0x430] sm:$0xff] %v199_v6  ;;  %v263_v6 = vld [vmem:[#allocation2 + $0x7f4] sm:$0xff] }
  0x94   :  { %942 = vst [vmem:[#allocation7 + $0x438] sm:$0xff] %v200_v7  ;;  %v264_v7 = vld [vmem:[#allocation2 + $0x7fc] sm:$0xff] }
  0x95   :  { %943 = vst [vmem:[#allocation7 + $0x440] sm:$0xff] %v201_v8  ;;  %v265_v8 = vld [vmem:[#allocation2 + $0x804] sm:$0xff] }
  0x96   :  { %944 = vst [vmem:[#allocation7 + $0x448] sm:$0xff] %v202_v9  ;;  %v266_v9 = vld [vmem:[#allocation2 + $0x80c] sm:$0xff] }
  0x97   :  { %945 = vst [vmem:[#allocation7 + $0x450] sm:$0xff] %v203_v10  ;;  %v267_v10 = vld [vmem:[#allocation2 + $0x814] sm:$0xff] }
  0x98   :  { %946 = vst [vmem:[#allocation7 + $0x458] sm:$0xff] %v204_v11  ;;  %v268_v11 = vld [vmem:[#allocation2 + $0x81c] sm:$0xff] }
  0x99   :  { %947 = vst [vmem:[#allocation7 + $0x460] sm:$0xff] %v205_v12  ;;  %v269_v12 = vld [vmem:[#allocation2 + $0x824] sm:$0xff] }
  0x9a   :  { %948 = vst [vmem:[#allocation7 + $0x468] sm:$0xff] %v206_v13  ;;  %v270_v13 = vld [vmem:[#allocation2 + $0x82c] sm:$0xff] }
  0x9b   :  { %949 = vst [vmem:[#allocation7 + $0x470] sm:$0xff] %v207_v14  ;;  %v271_v14 = vld [vmem:[#allocation2 + $0x834] sm:$0xff] }
  0x9c   :  { %950 = vst [vmem:[#allocation7 + $0x478] sm:$0xff] %v208_v15  ;;  %v272_v15 = vld [vmem:[#allocation2 + $0x83c] sm:$0xff] }
  0x9d   :  { %951 = vst [vmem:[#allocation7 + $0x480] sm:$0xff] %v209_v16  ;;  %v273_v16 = vld [vmem:[#allocation2 + $0x844] sm:$0xff] }
  0x9e   :  { %952 = vst [vmem:[#allocation7 + $0x488] sm:$0xff] %v210_v17  ;;  %v274_v17 = vld [vmem:[#allocation2 + $0x84c] sm:$0xff] }
  0x9f   :  { %953 = vst [vmem:[#allocation7 + $0x490] sm:$0xff] %v211_v18  ;;  %v275_v18 = vld [vmem:[#allocation2 + $0x854] sm:$0xff] }
  0xa0   :  { %954 = vst [vmem:[#allocation7 + $0x498] sm:$0xff] %v212_v19  ;;  %v276_v19 = vld [vmem:[#allocation2 + $0x85c] sm:$0xff] }
  0xa1   :  { %955 = vst [vmem:[#allocation7 + $0x4a0] sm:$0xff] %v213_v20  ;;  %v277_v20 = vld [vmem:[#allocation2 + $0x864] sm:$0xff] }
  0xa2   :  { %956 = vst [vmem:[#allocation7 + $0x4a8] sm:$0xff] %v214_v21  ;;  %v278_v21 = vld [vmem:[#allocation2 + $0x86c] sm:$0xff] }
  0xa3   :  { %957 = vst [vmem:[#allocation7 + $0x4b0] sm:$0xff] %v215_v22  ;;  %v279_v22 = vld [vmem:[#allocation2 + $0x874] sm:$0xff] }
  0xa4   :  { %958 = vst [vmem:[#allocation7 + $0x4b8] sm:$0xff] %v216_v23  ;;  %v280_v23 = vld [vmem:[#allocation2 + $0x87c] sm:$0xff] }
  0xa5   :  { %959 = vst [vmem:[#allocation7 + $0x4c0] sm:$0xff] %v217_v24  ;;  %v281_v24 = vld [vmem:[#allocation2 + $0x884] sm:$0xff] }
  0xa6   :  { %960 = vst [vmem:[#allocation7 + $0x4c8] sm:$0xff] %v218_v25  ;;  %v282_v25 = vld [vmem:[#allocation2 + $0x88c] sm:$0xff] }
  0xa7   :  { %961 = vst [vmem:[#allocation7 + $0x4d0] sm:$0xff] %v219_v26  ;;  %v283_v26 = vld [vmem:[#allocation2 + $0x894] sm:$0xff] }
  0xa8   :  { %962 = vst [vmem:[#allocation7 + $0x4d8] sm:$0xff] %v220_v27  ;;  %v284_v27 = vld [vmem:[#allocation2 + $0x89c] sm:$0xff] }
  0xa9   :  { %963 = vst [vmem:[#allocation7 + $0x4e0] sm:$0xff] %v221_v28  ;;  %v285_v28 = vld [vmem:[#allocation2 + $0x8a4] sm:$0xff] }
  0xaa   :  { %964 = vst [vmem:[#allocation7 + $0x4e8] sm:$0xff] %v222_v29  ;;  %v286_v29 = vld [vmem:[#allocation2 + $0x8ac] sm:$0xff] }
  0xab   :  { %965 = vst [vmem:[#allocation7 + $0x4f0] sm:$0xff] %v223_v30  ;;  %v287_v30 = vld [vmem:[#allocation2 + $0x8b4] sm:$0xff] }
  0xac   :  { %966 = vst [vmem:[#allocation7 + $0x4f8] sm:$0xff] %v224_v31  ;;  %v288_v31 = vld [vmem:[#allocation2 + $0x8bc] sm:$0xff] }
  0xad   :  { %967 = vst [vmem:[#allocation7 + $0x500] sm:$0xff] %v225_v32  ;;  %v289_v32 = vld [vmem:[#allocation2 + $0x8c4] sm:$0xff] }
  0xae   :  { %968 = vst [vmem:[#allocation7 + $0x508] sm:$0xff] %v226_v33  ;;  %v290_v33 = vld [vmem:[#allocation2 + $0x8cc] sm:$0xff] }
  0xaf   :  { %969 = vst [vmem:[#allocation7 + $0x510] sm:$0xff] %v227_v34  ;;  %v291_v34 = vld [vmem:[#allocation2 + $0x8d4] sm:$0xff] }
  0xb0   :  { %970 = vst [vmem:[#allocation7 + $0x518] sm:$0xff] %v228_v35  ;;  %v292_v35 = vld [vmem:[#allocation2 + $0x8dc] sm:$0xff] }
  0xb1   :  { %971 = vst [vmem:[#allocation7 + $0x520] sm:$0xff] %v229_v36  ;;  %v293_v36 = vld [vmem:[#allocation2 + $0x8e4] sm:$0xff] }
  0xb2   :  { %972 = vst [vmem:[#allocation7 + $0x528] sm:$0xff] %v230_v37  ;;  %v294_v37 = vld [vmem:[#allocation2 + $0x8ec] sm:$0xff] }
  0xb3   :  { %973 = vst [vmem:[#allocation7 + $0x530] sm:$0xff] %v231_v38  ;;  %v295_v38 = vld [vmem:[#allocation2 + $0x8f4] sm:$0xff] }
  0xb4   :  { %974 = vst [vmem:[#allocation7 + $0x538] sm:$0xff] %v232_v39  ;;  %v296_v39 = vld [vmem:[#allocation2 + $0x8fc] sm:$0xff] }
  0xb5   :  { %975 = vst [vmem:[#allocation7 + $0x540] sm:$0xff] %v233_v40  ;;  %v297_v40 = vld [vmem:[#allocation2 + $0x904] sm:$0xff] }
  0xb6   :  { %976 = vst [vmem:[#allocation7 + $0x548] sm:$0xff] %v234_v41  ;;  %v298_v41 = vld [vmem:[#allocation2 + $0x90c] sm:$0xff] }
  0xb7   :  { %977 = vst [vmem:[#allocation7 + $0x550] sm:$0xff] %v235_v42  ;;  %v299_v42 = vld [vmem:[#allocation2 + $0x914] sm:$0xff] }
  0xb8   :  { %978 = vst [vmem:[#allocation7 + $0x558] sm:$0xff] %v236_v43  ;;  %v300_v43 = vld [vmem:[#allocation2 + $0x91c] sm:$0xff] }
  0xb9   :  { %979 = vst [vmem:[#allocation7 + $0x560] sm:$0xff] %v237_v44  ;;  %v301_v44 = vld [vmem:[#allocation2 + $0x924] sm:$0xff] }
  0xba   :  { %980 = vst [vmem:[#allocation7 + $0x568] sm:$0xff] %v238_v45  ;;  %v302_v45 = vld [vmem:[#allocation2 + $0x92c] sm:$0xff] }
  0xbb   :  { %981 = vst [vmem:[#allocation7 + $0x570] sm:$0xff] %v239_v46  ;;  %v303_v46 = vld [vmem:[#allocation2 + $0x934] sm:$0xff] }
  0xbc   :  { %982 = vst [vmem:[#allocation7 + $0x578] sm:$0xff] %v240_v47  ;;  %v304_v47 = vld [vmem:[#allocation2 + $0x93c] sm:$0xff] }
  0xbd   :  { %983 = vst [vmem:[#allocation7 + $0x580] sm:$0xff] %v241_v48  ;;  %v305_v48 = vld [vmem:[#allocation2 + $0x944] sm:$0xff] }
  0xbe   :  { %984 = vst [vmem:[#allocation7 + $0x588] sm:$0xff] %v242_v49  ;;  %v306_v49 = vld [vmem:[#allocation2 + $0x94c] sm:$0xff] }
  0xbf   :  { %985 = vst [vmem:[#allocation7 + $0x590] sm:$0xff] %v243_v50  ;;  %v307_v50 = vld [vmem:[#allocation2 + $0x954] sm:$0xff] }
  0xc0   :  { %986 = vst [vmem:[#allocation7 + $0x598] sm:$0xff] %v244_v51  ;;  %v308_v51 = vld [vmem:[#allocation2 + $0x95c] sm:$0xff] }
  0xc1   :  { %987 = vst [vmem:[#allocation7 + $0x5a0] sm:$0xff] %v245_v52  ;;  %v309_v52 = vld [vmem:[#allocation2 + $0x964] sm:$0xff] }
  0xc2   :  { %988 = vst [vmem:[#allocation7 + $0x5a8] sm:$0xff] %v246_v53  ;;  %v310_v53 = vld [vmem:[#allocation2 + $0x96c] sm:$0xff] }
  0xc3   :  { %989 = vst [vmem:[#allocation7 + $0x5b0] sm:$0xff] %v247_v54  ;;  %v311_v54 = vld [vmem:[#allocation2 + $0x974] sm:$0xff] }
  0xc4   :  { %990 = vst [vmem:[#allocation7 + $0x5b8] sm:$0xff] %v248_v55  ;;  %v312_v55 = vld [vmem:[#allocation2 + $0x97c] sm:$0xff] }
  0xc5   :  { %991 = vst [vmem:[#allocation7 + $0x5c0] sm:$0xff] %v249_v56  ;;  %v313_v56 = vld [vmem:[#allocation2 + $0x984] sm:$0xff] }
  0xc6   :  { %992 = vst [vmem:[#allocation7 + $0x5c8] sm:$0xff] %v250_v57  ;;  %v314_v57 = vld [vmem:[#allocation2 + $0x98c] sm:$0xff] }
  0xc7   :  { %993 = vst [vmem:[#allocation7 + $0x5d0] sm:$0xff] %v251_v58  ;;  %v315_v58 = vld [vmem:[#allocation2 + $0x994] sm:$0xff] }
  0xc8   :  { %994 = vst [vmem:[#allocation7 + $0x5d8] sm:$0xff] %v252_v59  ;;  %v316_v59 = vld [vmem:[#allocation2 + $0x99c] sm:$0xff] }
  0xc9   :  { %995 = vst [vmem:[#allocation7 + $0x5e0] sm:$0xff] %v253_v60  ;;  %v317_v60 = vld [vmem:[#allocation2 + $0x9a4] sm:$0xff] }
  0xca   :  { %996 = vst [vmem:[#allocation7 + $0x5e8] sm:$0xff] %v254_v61  ;;  %v318_v61 = vld [vmem:[#allocation2 + $0x9ac] sm:$0xff] }
  0xcb   :  { %997 = vst [vmem:[#allocation7 + $0x5f0] sm:$0xff] %v255_v62  ;;  %v319_v62 = vld [vmem:[#allocation2 + $0x9b4] sm:$0xff] }
  0xcc   :  { %998 = vst [vmem:[#allocation7 + $0x5f8] sm:$0xff] %v256_v63  ;;  %v320_v63 = vld [vmem:[#allocation2 + $0x9bc] sm:$0xff] }
  0xcd   :  { %999 = vst [vmem:[#allocation7 + $0x600] sm:$0xff] %v257_v0  ;;  %v321_v0 = vld [vmem:[#allocation2 + $0x9c4] sm:$0xff] }
  0xce   :  { %1000 = vst [vmem:[#allocation7 + $0x608] sm:$0xff] %v258_v1  ;;  %v322_v1 = vld [vmem:[#allocation2 + $0x9cc] sm:$0xff] }
  0xcf   :  { %1001 = vst [vmem:[#allocation7 + $0x610] sm:$0xff] %v259_v2  ;;  %v323_v2 = vld [vmem:[#allocation2 + $0x9d4] sm:$0xff] }
  0xd0   :  { %1002 = vst [vmem:[#allocation7 + $0x618] sm:$0xff] %v260_v3  ;;  %v324_v3 = vld [vmem:[#allocation2 + $0x9dc] sm:$0xff] }
  0xd1   :  { %1003 = vst [vmem:[#allocation7 + $0x620] sm:$0xff] %v261_v4  ;;  %v325_v4 = vld [vmem:[#allocation2 + $0x9e4] sm:$0xff] }
  0xd2   :  { %1004 = vst [vmem:[#allocation7 + $0x628] sm:$0xff] %v262_v5  ;;  %v326_v5 = vld [vmem:[#allocation2 + $0x9ec] sm:$0xff] }
  0xd3   :  { %1005 = vst [vmem:[#allocation7 + $0x630] sm:$0xff] %v263_v6  ;;  %v327_v6 = vld [vmem:[#allocation2 + $0x9f4] sm:$0xff] }
  0xd4   :  { %1006 = vst [vmem:[#allocation7 + $0x638] sm:$0xff] %v264_v7  ;;  %v328_v7 = vld [vmem:[#allocation2 + $0x9fc] sm:$0xff] }
  0xd5   :  { %1007 = vst [vmem:[#allocation7 + $0x640] sm:$0xff] %v265_v8  ;;  %v329_v8 = vld [vmem:[#allocation2 + $0xa04] sm:$0xff] }
  0xd6   :  { %1008 = vst [vmem:[#allocation7 + $0x648] sm:$0xff] %v266_v9  ;;  %v330_v9 = vld [vmem:[#allocation2 + $0xa0c] sm:$0xff] }
  0xd7   :  { %1009 = vst [vmem:[#allocation7 + $0x650] sm:$0xff] %v267_v10  ;;  %v331_v10 = vld [vmem:[#allocation2 + $0xa14] sm:$0xff] }
  0xd8   :  { %1010 = vst [vmem:[#allocation7 + $0x658] sm:$0xff] %v268_v11  ;;  %v332_v11 = vld [vmem:[#allocation2 + $0xa1c] sm:$0xff] }
  0xd9   :  { %1011 = vst [vmem:[#allocation7 + $0x660] sm:$0xff] %v269_v12  ;;  %v333_v12 = vld [vmem:[#allocation2 + $0xa24] sm:$0xff] }
  0xda   :  { %1012 = vst [vmem:[#allocation7 + $0x668] sm:$0xff] %v270_v13  ;;  %v334_v13 = vld [vmem:[#allocation2 + $0xa2c] sm:$0xff] }
  0xdb   :  { %1013 = vst [vmem:[#allocation7 + $0x670] sm:$0xff] %v271_v14  ;;  %v335_v14 = vld [vmem:[#allocation2 + $0xa34] sm:$0xff] }
  0xdc   :  { %1014 = vst [vmem:[#allocation7 + $0x678] sm:$0xff] %v272_v15  ;;  %v336_v15 = vld [vmem:[#allocation2 + $0xa3c] sm:$0xff] }
  0xdd   :  { %1015 = vst [vmem:[#allocation7 + $0x680] sm:$0xff] %v273_v16  ;;  %v337_v16 = vld [vmem:[#allocation2 + $0xa44] sm:$0xff] }
  0xde   :  { %1016 = vst [vmem:[#allocation7 + $0x688] sm:$0xff] %v274_v17  ;;  %v338_v17 = vld [vmem:[#allocation2 + $0xa4c] sm:$0xff] }
  0xdf   :  { %1017 = vst [vmem:[#allocation7 + $0x690] sm:$0xff] %v275_v18  ;;  %v339_v18 = vld [vmem:[#allocation2 + $0xa54] sm:$0xff] }
  0xe0   :  { %1018 = vst [vmem:[#allocation7 + $0x698] sm:$0xff] %v276_v19  ;;  %v340_v19 = vld [vmem:[#allocation2 + $0xa5c] sm:$0xff] }
  0xe1   :  { %1019 = vst [vmem:[#allocation7 + $0x6a0] sm:$0xff] %v277_v20  ;;  %v341_v20 = vld [vmem:[#allocation2 + $0xa64] sm:$0xff] }
  0xe2   :  { %1020 = vst [vmem:[#allocation7 + $0x6a8] sm:$0xff] %v278_v21  ;;  %v342_v21 = vld [vmem:[#allocation2 + $0xa6c] sm:$0xff] }
  0xe3   :  { %1021 = vst [vmem:[#allocation7 + $0x6b0] sm:$0xff] %v279_v22  ;;  %v343_v22 = vld [vmem:[#allocation2 + $0xa74] sm:$0xff] }
  0xe4   :  { %1022 = vst [vmem:[#allocation7 + $0x6b8] sm:$0xff] %v280_v23  ;;  %v344_v23 = vld [vmem:[#allocation2 + $0xa7c] sm:$0xff] }
  0xe5   :  { %1023 = vst [vmem:[#allocation7 + $0x6c0] sm:$0xff] %v281_v24  ;;  %v345_v24 = vld [vmem:[#allocation2 + $0xa84] sm:$0xff] }
  0xe6   :  { %1024 = vst [vmem:[#allocation7 + $0x6c8] sm:$0xff] %v282_v25  ;;  %v346_v25 = vld [vmem:[#allocation2 + $0xa8c] sm:$0xff] }
  0xe7   :  { %1025 = vst [vmem:[#allocation7 + $0x6d0] sm:$0xff] %v283_v26  ;;  %v347_v26 = vld [vmem:[#allocation2 + $0xa94] sm:$0xff] }
  0xe8   :  { %1026 = vst [vmem:[#allocation7 + $0x6d8] sm:$0xff] %v284_v27  ;;  %v348_v27 = vld [vmem:[#allocation2 + $0xa9c] sm:$0xff] }
  0xe9   :  { %1027 = vst [vmem:[#allocation7 + $0x6e0] sm:$0xff] %v285_v28  ;;  %v349_v28 = vld [vmem:[#allocation2 + $0xaa4] sm:$0xff] }
  0xea   :  { %1028 = vst [vmem:[#allocation7 + $0x6e8] sm:$0xff] %v286_v29  ;;  %v350_v29 = vld [vmem:[#allocation2 + $0xaac] sm:$0xff] }
  0xeb   :  { %1029 = vst [vmem:[#allocation7 + $0x6f0] sm:$0xff] %v287_v30  ;;  %v351_v30 = vld [vmem:[#allocation2 + $0xab4] sm:$0xff] }
  0xec   :  { %1030 = vst [vmem:[#allocation7 + $0x6f8] sm:$0xff] %v288_v31  ;;  %v352_v31 = vld [vmem:[#allocation2 + $0xabc] sm:$0xff] }
  0xed   :  { %1031 = vst [vmem:[#allocation7 + $0x700] sm:$0xff] %v289_v32  ;;  %v353_v32 = vld [vmem:[#allocation2 + $0xac4] sm:$0xff] }
  0xee   :  { %1032 = vst [vmem:[#allocation7 + $0x708] sm:$0xff] %v290_v33  ;;  %v354_v33 = vld [vmem:[#allocation2 + $0xacc] sm:$0xff] }
  0xef   :  { %1033 = vst [vmem:[#allocation7 + $0x710] sm:$0xff] %v291_v34  ;;  %v355_v34 = vld [vmem:[#allocation2 + $0xad4] sm:$0xff] }
  0xf0   :  { %1034 = vst [vmem:[#allocation7 + $0x718] sm:$0xff] %v292_v35  ;;  %v356_v35 = vld [vmem:[#allocation2 + $0xadc] sm:$0xff] }
  0xf1   :  { %1035 = vst [vmem:[#allocation7 + $0x720] sm:$0xff] %v293_v36  ;;  %v357_v36 = vld [vmem:[#allocation2 + $0xae4] sm:$0xff] }
  0xf2   :  { %1036 = vst [vmem:[#allocation7 + $0x728] sm:$0xff] %v294_v37  ;;  %v358_v37 = vld [vmem:[#allocation2 + $0xaec] sm:$0xff] }
  0xf3   :  { %1037 = vst [vmem:[#allocation7 + $0x730] sm:$0xff] %v295_v38  ;;  %v359_v38 = vld [vmem:[#allocation2 + $0xaf4] sm:$0xff] }
  0xf4   :  { %1038 = vst [vmem:[#allocation7 + $0x738] sm:$0xff] %v296_v39  ;;  %v360_v39 = vld [vmem:[#allocation2 + $0xafc] sm:$0xff] }
  0xf5   :  { %1039 = vst [vmem:[#allocation7 + $0x740] sm:$0xff] %v297_v40  ;;  %v361_v40 = vld [vmem:[#allocation2 + $0xb04] sm:$0xff] }
  0xf6   :  { %1040 = vst [vmem:[#allocation7 + $0x748] sm:$0xff] %v298_v41  ;;  %v362_v41 = vld [vmem:[#allocation2 + $0xb0c] sm:$0xff] }
  0xf7   :  { %1041 = vst [vmem:[#allocation7 + $0x750] sm:$0xff] %v299_v42  ;;  %v363_v42 = vld [vmem:[#allocation2 + $0xb14] sm:$0xff] }
  0xf8   :  { %1042 = vst [vmem:[#allocation7 + $0x758] sm:$0xff] %v300_v43  ;;  %v364_v43 = vld [vmem:[#allocation2 + $0xb1c] sm:$0xff] }
  0xf9   :  { %1043 = vst [vmem:[#allocation7 + $0x760] sm:$0xff] %v301_v44  ;;  %v365_v44 = vld [vmem:[#allocation2 + $0xb24] sm:$0xff] }
  0xfa   :  { %1044 = vst [vmem:[#allocation7 + $0x768] sm:$0xff] %v302_v45  ;;  %v366_v45 = vld [vmem:[#allocation2 + $0xb2c] sm:$0xff] }
  0xfb   :  { %1045 = vst [vmem:[#allocation7 + $0x770] sm:$0xff] %v303_v46  ;;  %v367_v46 = vld [vmem:[#allocation2 + $0xb34] sm:$0xff] }
  0xfc   :  { %1046 = vst [vmem:[#allocation7 + $0x778] sm:$0xff] %v304_v47  ;;  %v368_v47 = vld [vmem:[#allocation2 + $0xb3c] sm:$0xff] }
  0xfd   :  { %1047 = vst [vmem:[#allocation7 + $0x780] sm:$0xff] %v305_v48  ;;  %v369_v48 = vld [vmem:[#allocation2 + $0xb44] sm:$0xff] }
  0xfe   :  { %1048 = vst [vmem:[#allocation7 + $0x788] sm:$0xff] %v306_v49  ;;  %v370_v49 = vld [vmem:[#allocation2 + $0xb4c] sm:$0xff] }
  0xff   :  { %1049 = vst [vmem:[#allocation7 + $0x790] sm:$0xff] %v307_v50  ;;  %v371_v50 = vld [vmem:[#allocation2 + $0xb54] sm:$0xff] }
 0x100   :  { %1050 = vst [vmem:[#allocation7 + $0x798] sm:$0xff] %v308_v51  ;;  %v372_v51 = vld [vmem:[#allocation2 + $0xb5c] sm:$0xff] }
 0x101   :  { %1051 = vst [vmem:[#allocation7 + $0x7a0] sm:$0xff] %v309_v52  ;;  %v373_v52 = vld [vmem:[#allocation2 + $0xb64] sm:$0xff] }
 0x102   :  { %1052 = vst [vmem:[#allocation7 + $0x7a8] sm:$0xff] %v310_v53  ;;  %v374_v53 = vld [vmem:[#allocation2 + $0xb6c] sm:$0xff] }
 0x103   :  { %1053 = vst [vmem:[#allocation7 + $0x7b0] sm:$0xff] %v311_v54  ;;  %v375_v54 = vld [vmem:[#allocation2 + $0xb74] sm:$0xff] }
 0x104   :  { %1054 = vst [vmem:[#allocation7 + $0x7b8] sm:$0xff] %v312_v55  ;;  %v376_v55 = vld [vmem:[#allocation2 + $0xb7c] sm:$0xff] }
 0x105   :  { %1055 = vst [vmem:[#allocation7 + $0x7c0] sm:$0xff] %v313_v56  ;;  %v377_v56 = vld [vmem:[#allocation2 + $0xb84] sm:$0xff] }
 0x106   :  { %1056 = vst [vmem:[#allocation7 + $0x7c8] sm:$0xff] %v314_v57  ;;  %v378_v57 = vld [vmem:[#allocation2 + $0xb8c] sm:$0xff] }
 0x107   :  { %1057 = vst [vmem:[#allocation7 + $0x7d0] sm:$0xff] %v315_v58  ;;  %v379_v58 = vld [vmem:[#allocation2 + $0xb94] sm:$0xff] }
 0x108   :  { %1058 = vst [vmem:[#allocation7 + $0x7d8] sm:$0xff] %v316_v59  ;;  %v380_v59 = vld [vmem:[#allocation2 + $0xb9c] sm:$0xff] }
 0x109   :  { %1059 = vst [vmem:[#allocation7 + $0x7e0] sm:$0xff] %v317_v60  ;;  %v381_v60 = vld [vmem:[#allocation2 + $0xba4] sm:$0xff] }
 0x10a   :  { %1060 = vst [vmem:[#allocation7 + $0x7e8] sm:$0xff] %v318_v61  ;;  %v382_v61 = vld [vmem:[#allocation2 + $0xbac] sm:$0xff] }
 0x10b   :  { %1061 = vst [vmem:[#allocation7 + $0x7f0] sm:$0xff] %v319_v62  ;;  %v383_v62 = vld [vmem:[#allocation2 + $0xbb4] sm:$0xff] }
 0x10c   :  { %1062 = vst [vmem:[#allocation7 + $0x7f8] sm:$0xff] %v320_v63  ;;  %v384_v63 = vld [vmem:[#allocation2 + $0xbbc] sm:$0xff] }
 0x10d   :  { %1063 = vst [vmem:[#allocation7 + $0x800] sm:$0xff] %v321_v0  ;;  %v385_v0 = vld [vmem:[#allocation2 + $0xbc4] sm:$0xff] }
 0x10e   :  { %1064 = vst [vmem:[#allocation7 + $0x808] sm:$0xff] %v322_v1  ;;  %v386_v1 = vld [vmem:[#allocation2 + $0xbcc] sm:$0xff] }
 0x10f   :  { %1065 = vst [vmem:[#allocation7 + $0x810] sm:$0xff] %v323_v2  ;;  %v387_v2 = vld [vmem:[#allocation2 + $0xbd4] sm:$0xff] }
 0x110   :  { %1066 = vst [vmem:[#allocation7 + $0x818] sm:$0xff] %v324_v3  ;;  %v388_v3 = vld [vmem:[#allocation2 + $0xbdc] sm:$0xff] }
 0x111   :  { %1067 = vst [vmem:[#allocation7 + $0x820] sm:$0xff] %v325_v4  ;;  %v389_v4 = vld [vmem:[#allocation2 + $0xbe4] sm:$0xff] }
 0x112   :  { %1068 = vst [vmem:[#allocation7 + $0x828] sm:$0xff] %v326_v5  ;;  %v390_v5 = vld [vmem:[#allocation2 + $0xbec] sm:$0xff] }
 0x113   :  { %1069 = vst [vmem:[#allocation7 + $0x830] sm:$0xff] %v327_v6  ;;  %v391_v6 = vld [vmem:[#allocation2 + $0xbf4] sm:$0xff] }
 0x114   :  { %1070 = vst [vmem:[#allocation7 + $0x838] sm:$0xff] %v328_v7  ;;  %v392_v7 = vld [vmem:[#allocation2 + $0xbfc] sm:$0xff] }
 0x115   :  { %1071 = vst [vmem:[#allocation7 + $0x840] sm:$0xff] %v329_v8  ;;  %v393_v8 = vld [vmem:[#allocation2 + $0xc04] sm:$0xff] }
 0x116   :  { %1072 = vst [vmem:[#allocation7 + $0x848] sm:$0xff] %v330_v9  ;;  %v394_v9 = vld [vmem:[#allocation2 + $0xc0c] sm:$0xff] }
 0x117   :  { %1073 = vst [vmem:[#allocation7 + $0x850] sm:$0xff] %v331_v10  ;;  %v395_v10 = vld [vmem:[#allocation2 + $0xc14] sm:$0xff] }
 0x118   :  { %1074 = vst [vmem:[#allocation7 + $0x858] sm:$0xff] %v332_v11  ;;  %v396_v11 = vld [vmem:[#allocation2 + $0xc1c] sm:$0xff] }
 0x119   :  { %1075 = vst [vmem:[#allocation7 + $0x860] sm:$0xff] %v333_v12  ;;  %v397_v12 = vld [vmem:[#allocation2 + $0xc24] sm:$0xff] }
 0x11a   :  { %1076 = vst [vmem:[#allocation7 + $0x868] sm:$0xff] %v334_v13  ;;  %v398_v13 = vld [vmem:[#allocation2 + $0xc2c] sm:$0xff] }
 0x11b   :  { %1077 = vst [vmem:[#allocation7 + $0x870] sm:$0xff] %v335_v14  ;;  %v399_v14 = vld [vmem:[#allocation2 + $0xc34] sm:$0xff] }
 0x11c   :  { %1078 = vst [vmem:[#allocation7 + $0x878] sm:$0xff] %v336_v15  ;;  %v400_v15 = vld [vmem:[#allocation2 + $0xc3c] sm:$0xff] }
 0x11d   :  { %1079 = vst [vmem:[#allocation7 + $0x880] sm:$0xff] %v337_v16  ;;  %v401_v16 = vld [vmem:[#allocation2 + $0xc44] sm:$0xff] }
 0x11e   :  { %1080 = vst [vmem:[#allocation7 + $0x888] sm:$0xff] %v338_v17  ;;  %v402_v17 = vld [vmem:[#allocation2 + $0xc4c] sm:$0xff] }
 0x11f   :  { %1081 = vst [vmem:[#allocation7 + $0x890] sm:$0xff] %v339_v18  ;;  %v403_v18 = vld [vmem:[#allocation2 + $0xc54] sm:$0xff] }
 0x120   :  { %1082 = vst [vmem:[#allocation7 + $0x898] sm:$0xff] %v340_v19  ;;  %v404_v19 = vld [vmem:[#allocation2 + $0xc5c] sm:$0xff] }
 0x121   :  { %1083 = vst [vmem:[#allocation7 + $0x8a0] sm:$0xff] %v341_v20  ;;  %v405_v20 = vld [vmem:[#allocation2 + $0xc64] sm:$0xff] }
 0x122   :  { %1084 = vst [vmem:[#allocation7 + $0x8a8] sm:$0xff] %v342_v21  ;;  %v406_v21 = vld [vmem:[#allocation2 + $0xc6c] sm:$0xff] }
 0x123   :  { %1085 = vst [vmem:[#allocation7 + $0x8b0] sm:$0xff] %v343_v22  ;;  %v407_v22 = vld [vmem:[#allocation2 + $0xc74] sm:$0xff] }
 0x124   :  { %1086 = vst [vmem:[#allocation7 + $0x8b8] sm:$0xff] %v344_v23  ;;  %v408_v23 = vld [vmem:[#allocation2 + $0xc7c] sm:$0xff] }
 0x125   :  { %1087 = vst [vmem:[#allocation7 + $0x8c0] sm:$0xff] %v345_v24  ;;  %v409_v24 = vld [vmem:[#allocation2 + $0xc84] sm:$0xff] }
 0x126   :  { %1088 = vst [vmem:[#allocation7 + $0x8c8] sm:$0xff] %v346_v25  ;;  %v410_v25 = vld [vmem:[#allocation2 + $0xc8c] sm:$0xff] }
 0x127   :  { %1089 = vst [vmem:[#allocation7 + $0x8d0] sm:$0xff] %v347_v26  ;;  %v411_v26 = vld [vmem:[#allocation2 + $0xc94] sm:$0xff] }
 0x128   :  { %1090 = vst [vmem:[#allocation7 + $0x8d8] sm:$0xff] %v348_v27  ;;  %v412_v27 = vld [vmem:[#allocation2 + $0xc9c] sm:$0xff] }
 0x129   :  { %1091 = vst [vmem:[#allocation7 + $0x8e0] sm:$0xff] %v349_v28  ;;  %v413_v28 = vld [vmem:[#allocation2 + $0xca4] sm:$0xff] }
 0x12a   :  { %1092 = vst [vmem:[#allocation7 + $0x8e8] sm:$0xff] %v350_v29  ;;  %v414_v29 = vld [vmem:[#allocation2 + $0xcac] sm:$0xff] }
 0x12b   :  { %1093 = vst [vmem:[#allocation7 + $0x8f0] sm:$0xff] %v351_v30  ;;  %v415_v30 = vld [vmem:[#allocation2 + $0xcb4] sm:$0xff] }
 0x12c   :  { %1094 = vst [vmem:[#allocation7 + $0x8f8] sm:$0xff] %v352_v31  ;;  %v416_v31 = vld [vmem:[#allocation2 + $0xcbc] sm:$0xff] }
 0x12d   :  { %1095 = vst [vmem:[#allocation7 + $0x900] sm:$0xff] %v353_v32  ;;  %v417_v32 = vld [vmem:[#allocation2 + $0xcc4] sm:$0xff] }
 0x12e   :  { %1096 = vst [vmem:[#allocation7 + $0x908] sm:$0xff] %v354_v33  ;;  %v418_v33 = vld [vmem:[#allocation2 + $0xccc] sm:$0xff] }
 0x12f   :  { %1097 = vst [vmem:[#allocation7 + $0x910] sm:$0xff] %v355_v34  ;;  %v419_v34 = vld [vmem:[#allocation2 + $0xcd4] sm:$0xff] }
 0x130   :  { %1098 = vst [vmem:[#allocation7 + $0x918] sm:$0xff] %v356_v35  ;;  %v420_v35 = vld [vmem:[#allocation2 + $0xcdc] sm:$0xff] }
 0x131   :  { %1099 = vst [vmem:[#allocation7 + $0x920] sm:$0xff] %v357_v36  ;;  %v421_v36 = vld [vmem:[#allocation2 + $0xce4] sm:$0xff] }
 0x132   :  { %1100 = vst [vmem:[#allocation7 + $0x928] sm:$0xff] %v358_v37  ;;  %v422_v37 = vld [vmem:[#allocation2 + $0xcec] sm:$0xff] }
 0x133   :  { %1101 = vst [vmem:[#allocation7 + $0x930] sm:$0xff] %v359_v38  ;;  %v423_v38 = vld [vmem:[#allocation2 + $0xcf4] sm:$0xff] }
 0x134   :  { %1102 = vst [vmem:[#allocation7 + $0x938] sm:$0xff] %v360_v39  ;;  %v424_v39 = vld [vmem:[#allocation2 + $0xcfc] sm:$0xff] }
 0x135   :  { %1103 = vst [vmem:[#allocation7 + $0x940] sm:$0xff] %v361_v40  ;;  %v425_v40 = vld [vmem:[#allocation2 + $0xd04] sm:$0xff] }
 0x136   :  { %1104 = vst [vmem:[#allocation7 + $0x948] sm:$0xff] %v362_v41  ;;  %v426_v41 = vld [vmem:[#allocation2 + $0xd0c] sm:$0xff] }
 0x137   :  { %1105 = vst [vmem:[#allocation7 + $0x950] sm:$0xff] %v363_v42  ;;  %v427_v42 = vld [vmem:[#allocation2 + $0xd14] sm:$0xff] }
 0x138   :  { %1106 = vst [vmem:[#allocation7 + $0x958] sm:$0xff] %v364_v43  ;;  %v428_v43 = vld [vmem:[#allocation2 + $0xd1c] sm:$0xff] }
 0x139   :  { %1107 = vst [vmem:[#allocation7 + $0x960] sm:$0xff] %v365_v44  ;;  %v429_v44 = vld [vmem:[#allocation2 + $0xd24] sm:$0xff] }
 0x13a   :  { %1108 = vst [vmem:[#allocation7 + $0x968] sm:$0xff] %v366_v45  ;;  %v430_v45 = vld [vmem:[#allocation2 + $0xd2c] sm:$0xff] }
 0x13b   :  { %1109 = vst [vmem:[#allocation7 + $0x970] sm:$0xff] %v367_v46  ;;  %v431_v46 = vld [vmem:[#allocation2 + $0xd34] sm:$0xff] }
 0x13c   :  { %1110 = vst [vmem:[#allocation7 + $0x978] sm:$0xff] %v368_v47  ;;  %v432_v47 = vld [vmem:[#allocation2 + $0xd3c] sm:$0xff] }
 0x13d   :  { %1111 = vst [vmem:[#allocation7 + $0x980] sm:$0xff] %v369_v48  ;;  %v433_v48 = vld [vmem:[#allocation2 + $0xd44] sm:$0xff] }
 0x13e   :  { %1112 = vst [vmem:[#allocation7 + $0x988] sm:$0xff] %v370_v49  ;;  %v434_v49 = vld [vmem:[#allocation2 + $0xd4c] sm:$0xff] }
 0x13f   :  { %1113 = vst [vmem:[#allocation7 + $0x990] sm:$0xff] %v371_v50  ;;  %v435_v50 = vld [vmem:[#allocation2 + $0xd54] sm:$0xff] }
 0x140   :  { %1114 = vst [vmem:[#allocation7 + $0x998] sm:$0xff] %v372_v51  ;;  %v436_v51 = vld [vmem:[#allocation2 + $0xd5c] sm:$0xff] }
 0x141   :  { %1115 = vst [vmem:[#allocation7 + $0x9a0] sm:$0xff] %v373_v52  ;;  %v437_v52 = vld [vmem:[#allocation2 + $0xd64] sm:$0xff] }
 0x142   :  { %1116 = vst [vmem:[#allocation7 + $0x9a8] sm:$0xff] %v374_v53  ;;  %v438_v53 = vld [vmem:[#allocation2 + $0xd6c] sm:$0xff] }
 0x143   :  { %1117 = vst [vmem:[#allocation7 + $0x9b0] sm:$0xff] %v375_v54  ;;  %v439_v54 = vld [vmem:[#allocation2 + $0xd74] sm:$0xff] }
 0x144   :  { %1118 = vst [vmem:[#allocation7 + $0x9b8] sm:$0xff] %v376_v55  ;;  %v440_v55 = vld [vmem:[#allocation2 + $0xd7c] sm:$0xff] }
 0x145   :  { %1119 = vst [vmem:[#allocation7 + $0x9c0] sm:$0xff] %v377_v56  ;;  %v441_v56 = vld [vmem:[#allocation2 + $0xd84] sm:$0xff] }
 0x146   :  { %1120 = vst [vmem:[#allocation7 + $0x9c8] sm:$0xff] %v378_v57  ;;  %v442_v57 = vld [vmem:[#allocation2 + $0xd8c] sm:$0xff] }
 0x147   :  { %1121 = vst [vmem:[#allocation7 + $0x9d0] sm:$0xff] %v379_v58  ;;  %v443_v58 = vld [vmem:[#allocation2 + $0xd94] sm:$0xff] }
 0x148   :  { %1122 = vst [vmem:[#allocation7 + $0x9d8] sm:$0xff] %v380_v59  ;;  %v444_v59 = vld [vmem:[#allocation2 + $0xd9c] sm:$0xff] }
 0x149   :  { %1123 = vst [vmem:[#allocation7 + $0x9e0] sm:$0xff] %v381_v60  ;;  %v445_v60 = vld [vmem:[#allocation2 + $0xda4] sm:$0xff] }
 0x14a   :  { %1124 = vst [vmem:[#allocation7 + $0x9e8] sm:$0xff] %v382_v61  ;;  %v446_v61 = vld [vmem:[#allocation2 + $0xdac] sm:$0xff] }
 0x14b   :  { %1125 = vst [vmem:[#allocation7 + $0x9f0] sm:$0xff] %v383_v62  ;;  %v447_v62 = vld [vmem:[#allocation2 + $0xdb4] sm:$0xff] }
 0x14c   :  { %1126 = vst [vmem:[#allocation7 + $0x9f8] sm:$0xff] %v384_v63  ;;  %v448_v63 = vld [vmem:[#allocation2 + $0xdbc] sm:$0xff] }
 0x14d   :  { %1127 = vst [vmem:[#allocation7 + $0xa00] sm:$0xff] %v385_v0  ;;  %v449_v0 = vld [vmem:[#allocation2 + $0xdc4] sm:$0xff] }
 0x14e   :  { %1128 = vst [vmem:[#allocation7 + $0xa08] sm:$0xff] %v386_v1  ;;  %v450_v1 = vld [vmem:[#allocation2 + $0xdcc] sm:$0xff] }
 0x14f   :  { %1129 = vst [vmem:[#allocation7 + $0xa10] sm:$0xff] %v387_v2  ;;  %v451_v2 = vld [vmem:[#allocation2 + $0xdd4] sm:$0xff] }
 0x150   :  { %1130 = vst [vmem:[#allocation7 + $0xa18] sm:$0xff] %v388_v3  ;;  %v452_v3 = vld [vmem:[#allocation2 + $0xddc] sm:$0xff] }
 0x151   :  { %1131 = vst [vmem:[#allocation7 + $0xa20] sm:$0xff] %v389_v4  ;;  %v453_v4 = vld [vmem:[#allocation2 + $0xde4] sm:$0xff] }
 0x152   :  { %1132 = vst [vmem:[#allocation7 + $0xa28] sm:$0xff] %v390_v5  ;;  %v454_v5 = vld [vmem:[#allocation2 + $0xdec] sm:$0xff] }
 0x153   :  { %1133 = vst [vmem:[#allocation7 + $0xa30] sm:$0xff] %v391_v6  ;;  %v455_v6 = vld [vmem:[#allocation2 + $0xdf4] sm:$0xff] }
 0x154   :  { %1134 = vst [vmem:[#allocation7 + $0xa38] sm:$0xff] %v392_v7  ;;  %v456_v7 = vld [vmem:[#allocation2 + $0xdfc] sm:$0xff] }
 0x155   :  { %1135 = vst [vmem:[#allocation7 + $0xa40] sm:$0xff] %v393_v8  ;;  %v457_v8 = vld [vmem:[#allocation2 + $0xe04] sm:$0xff] }
 0x156   :  { %1136 = vst [vmem:[#allocation7 + $0xa48] sm:$0xff] %v394_v9  ;;  %v458_v9 = vld [vmem:[#allocation2 + $0xe0c] sm:$0xff] }
 0x157   :  { %1137 = vst [vmem:[#allocation7 + $0xa50] sm:$0xff] %v395_v10  ;;  %v459_v10 = vld [vmem:[#allocation2 + $0xe14] sm:$0xff] }
 0x158   :  { %1138 = vst [vmem:[#allocation7 + $0xa58] sm:$0xff] %v396_v11  ;;  %v460_v11 = vld [vmem:[#allocation2 + $0xe1c] sm:$0xff] }
 0x159   :  { %1139 = vst [vmem:[#allocation7 + $0xa60] sm:$0xff] %v397_v12  ;;  %v461_v12 = vld [vmem:[#allocation2 + $0xe24] sm:$0xff] }
 0x15a   :  { %1140 = vst [vmem:[#allocation7 + $0xa68] sm:$0xff] %v398_v13  ;;  %v462_v13 = vld [vmem:[#allocation2 + $0xe2c] sm:$0xff] }
 0x15b   :  { %1141 = vst [vmem:[#allocation7 + $0xa70] sm:$0xff] %v399_v14  ;;  %v463_v14 = vld [vmem:[#allocation2 + $0xe34] sm:$0xff] }
 0x15c   :  { %1142 = vst [vmem:[#allocation7 + $0xa78] sm:$0xff] %v400_v15  ;;  %v464_v15 = vld [vmem:[#allocation2 + $0xe3c] sm:$0xff] }
 0x15d   :  { %1143 = vst [vmem:[#allocation7 + $0xa80] sm:$0xff] %v401_v16  ;;  %v465_v16 = vld [vmem:[#allocation2 + $0xe44] sm:$0xff] }
 0x15e   :  { %1144 = vst [vmem:[#allocation7 + $0xa88] sm:$0xff] %v402_v17  ;;  %v466_v17 = vld [vmem:[#allocation2 + $0xe4c] sm:$0xff] }
 0x15f   :  { %1145 = vst [vmem:[#allocation7 + $0xa90] sm:$0xff] %v403_v18  ;;  %v467_v18 = vld [vmem:[#allocation2 + $0xe54] sm:$0xff] }
 0x160   :  { %1146 = vst [vmem:[#allocation7 + $0xa98] sm:$0xff] %v404_v19  ;;  %v468_v19 = vld [vmem:[#allocation2 + $0xe5c] sm:$0xff] }
 0x161   :  { %1147 = vst [vmem:[#allocation7 + $0xaa0] sm:$0xff] %v405_v20  ;;  %v469_v20 = vld [vmem:[#allocation2 + $0xe64] sm:$0xff] }
 0x162   :  { %1148 = vst [vmem:[#allocation7 + $0xaa8] sm:$0xff] %v406_v21  ;;  %v470_v21 = vld [vmem:[#allocation2 + $0xe6c] sm:$0xff] }
 0x163   :  { %1149 = vst [vmem:[#allocation7 + $0xab0] sm:$0xff] %v407_v22  ;;  %v471_v22 = vld [vmem:[#allocation2 + $0xe74] sm:$0xff] }
 0x164   :  { %1150 = vst [vmem:[#allocation7 + $0xab8] sm:$0xff] %v408_v23  ;;  %v472_v23 = vld [vmem:[#allocation2 + $0xe7c] sm:$0xff] }
 0x165   :  { %1151 = vst [vmem:[#allocation7 + $0xac0] sm:$0xff] %v409_v24  ;;  %v473_v24 = vld [vmem:[#allocation2 + $0xe84] sm:$0xff] }
 0x166   :  { %1152 = vst [vmem:[#allocation7 + $0xac8] sm:$0xff] %v410_v25  ;;  %v474_v25 = vld [vmem:[#allocation2 + $0xe8c] sm:$0xff] }
 0x167   :  { %1153 = vst [vmem:[#allocation7 + $0xad0] sm:$0xff] %v411_v26  ;;  %v475_v26 = vld [vmem:[#allocation2 + $0xe94] sm:$0xff] }
 0x168   :  { %1154 = vst [vmem:[#allocation7 + $0xad8] sm:$0xff] %v412_v27  ;;  %v476_v27 = vld [vmem:[#allocation2 + $0xe9c] sm:$0xff] }
 0x169   :  { %1155 = vst [vmem:[#allocation7 + $0xae0] sm:$0xff] %v413_v28  ;;  %v477_v28 = vld [vmem:[#allocation2 + $0xea4] sm:$0xff] }
 0x16a   :  { %1156 = vst [vmem:[#allocation7 + $0xae8] sm:$0xff] %v414_v29  ;;  %v478_v29 = vld [vmem:[#allocation2 + $0xeac] sm:$0xff] }
 0x16b   :  { %1157 = vst [vmem:[#allocation7 + $0xaf0] sm:$0xff] %v415_v30  ;;  %v479_v30 = vld [vmem:[#allocation2 + $0xeb4] sm:$0xff] }
 0x16c   :  { %1158 = vst [vmem:[#allocation7 + $0xaf8] sm:$0xff] %v416_v31  ;;  %v480_v31 = vld [vmem:[#allocation2 + $0xebc] sm:$0xff] }
 0x16d   :  { %1159 = vst [vmem:[#allocation7 + $0xb00] sm:$0xff] %v417_v32  ;;  %v481_v32 = vld [vmem:[#allocation2 + $0xec4] sm:$0xff] }
 0x16e   :  { %1160 = vst [vmem:[#allocation7 + $0xb08] sm:$0xff] %v418_v33  ;;  %v482_v33 = vld [vmem:[#allocation2 + $0xecc] sm:$0xff] }
 0x16f   :  { %1161 = vst [vmem:[#allocation7 + $0xb10] sm:$0xff] %v419_v34  ;;  %v483_v34 = vld [vmem:[#allocation2 + $0xed4] sm:$0xff] }
 0x170   :  { %1162 = vst [vmem:[#allocation7 + $0xb18] sm:$0xff] %v420_v35  ;;  %v484_v35 = vld [vmem:[#allocation2 + $0xedc] sm:$0xff] }
 0x171   :  { %1163 = vst [vmem:[#allocation7 + $0xb20] sm:$0xff] %v421_v36  ;;  %v485_v36 = vld [vmem:[#allocation2 + $0xee4] sm:$0xff] }
 0x172   :  { %1164 = vst [vmem:[#allocation7 + $0xb28] sm:$0xff] %v422_v37  ;;  %v486_v37 = vld [vmem:[#allocation2 + $0xeec] sm:$0xff] }
 0x173   :  { %1165 = vst [vmem:[#allocation7 + $0xb30] sm:$0xff] %v423_v38  ;;  %v487_v38 = vld [vmem:[#allocation2 + $0xef4] sm:$0xff] }
 0x174   :  { %1166 = vst [vmem:[#allocation7 + $0xb38] sm:$0xff] %v424_v39  ;;  %v488_v39 = vld [vmem:[#allocation2 + $0xefc] sm:$0xff] }
 0x175   :  { %1167 = vst [vmem:[#allocation7 + $0xb40] sm:$0xff] %v425_v40  ;;  %v489_v40 = vld [vmem:[#allocation2 + $0xf04] sm:$0xff] }
 0x176   :  { %1168 = vst [vmem:[#allocation7 + $0xb48] sm:$0xff] %v426_v41  ;;  %v490_v41 = vld [vmem:[#allocation2 + $0xf0c] sm:$0xff] }
 0x177   :  { %1169 = vst [vmem:[#allocation7 + $0xb50] sm:$0xff] %v427_v42  ;;  %v491_v42 = vld [vmem:[#allocation2 + $0xf14] sm:$0xff] }
 0x178   :  { %1170 = vst [vmem:[#allocation7 + $0xb58] sm:$0xff] %v428_v43  ;;  %v492_v43 = vld [vmem:[#allocation2 + $0xf1c] sm:$0xff] }
 0x179   :  { %1171 = vst [vmem:[#allocation7 + $0xb60] sm:$0xff] %v429_v44  ;;  %v493_v44 = vld [vmem:[#allocation2 + $0xf24] sm:$0xff] }
 0x17a   :  { %1172 = vst [vmem:[#allocation7 + $0xb68] sm:$0xff] %v430_v45  ;;  %v494_v45 = vld [vmem:[#allocation2 + $0xf2c] sm:$0xff] }
 0x17b   :  { %1173 = vst [vmem:[#allocation7 + $0xb70] sm:$0xff] %v431_v46  ;;  %v495_v46 = vld [vmem:[#allocation2 + $0xf34] sm:$0xff] }
 0x17c   :  { %1174 = vst [vmem:[#allocation7 + $0xb78] sm:$0xff] %v432_v47  ;;  %v496_v47 = vld [vmem:[#allocation2 + $0xf3c] sm:$0xff] }
 0x17d   :  { %1175 = vst [vmem:[#allocation7 + $0xb80] sm:$0xff] %v433_v48  ;;  %v497_v48 = vld [vmem:[#allocation2 + $0xf44] sm:$0xff] }
 0x17e   :  { %1176 = vst [vmem:[#allocation7 + $0xb88] sm:$0xff] %v434_v49  ;;  %v498_v49 = vld [vmem:[#allocation2 + $0xf4c] sm:$0xff] }
 0x17f   :  { %1177 = vst [vmem:[#allocation7 + $0xb90] sm:$0xff] %v435_v50  ;;  %v499_v50 = vld [vmem:[#allocation2 + $0xf54] sm:$0xff] }
 0x180   :  { %1178 = vst [vmem:[#allocation7 + $0xb98] sm:$0xff] %v436_v51  ;;  %v500_v51 = vld [vmem:[#allocation2 + $0xf5c] sm:$0xff] }
 0x181   :  { %1179 = vst [vmem:[#allocation7 + $0xba0] sm:$0xff] %v437_v52  ;;  %v501_v52 = vld [vmem:[#allocation2 + $0xf64] sm:$0xff] }
 0x182   :  { %1180 = vst [vmem:[#allocation7 + $0xba8] sm:$0xff] %v438_v53  ;;  %v502_v53 = vld [vmem:[#allocation2 + $0xf6c] sm:$0xff] }
 0x183   :  { %1181 = vst [vmem:[#allocation7 + $0xbb0] sm:$0xff] %v439_v54  ;;  %v503_v54 = vld [vmem:[#allocation2 + $0xf74] sm:$0xff] }
 0x184   :  { %1182 = vst [vmem:[#allocation7 + $0xbb8] sm:$0xff] %v440_v55  ;;  %v504_v55 = vld [vmem:[#allocation2 + $0xf7c] sm:$0xff] }
 0x185   :  { %1183 = vst [vmem:[#allocation7 + $0xbc0] sm:$0xff] %v441_v56  ;;  %v505_v56 = vld [vmem:[#allocation2 + $0xf84] sm:$0xff] }
 0x186   :  { %1184 = vst [vmem:[#allocation7 + $0xbc8] sm:$0xff] %v442_v57  ;;  %v506_v57 = vld [vmem:[#allocation2 + $0xf8c] sm:$0xff] }
 0x187   :  { %1185 = vst [vmem:[#allocation7 + $0xbd0] sm:$0xff] %v443_v58  ;;  %v507_v58 = vld [vmem:[#allocation2 + $0xf94] sm:$0xff] }
 0x188   :  { %1186 = vst [vmem:[#allocation7 + $0xbd8] sm:$0xff] %v444_v59  ;;  %v508_v59 = vld [vmem:[#allocation2 + $0xf9c] sm:$0xff] }
 0x189   :  { %1187 = vst [vmem:[#allocation7 + $0xbe0] sm:$0xff] %v445_v60  ;;  %v509_v60 = vld [vmem:[#allocation2 + $0xfa4] sm:$0xff] }
 0x18a   :  { %1188 = vst [vmem:[#allocation7 + $0xbe8] sm:$0xff] %v446_v61  ;;  %v510_v61 = vld [vmem:[#allocation2 + $0xfac] sm:$0xff] }
 0x18b   :  { %1189 = vst [vmem:[#allocation7 + $0xbf0] sm:$0xff] %v447_v62  ;;  %v511_v62 = vld [vmem:[#allocation2 + $0xfb4] sm:$0xff] }
 0x18c   :  { %1190 = vst [vmem:[#allocation7 + $0xbf8] sm:$0xff] %v448_v63  ;;  %v512_v63 = vld [vmem:[#allocation2 + $0xfbc] sm:$0xff] }
 0x18d   :  { %1191 = vst [vmem:[#allocation7 + $0xc00] sm:$0xff] %v449_v0  ;;  %v513_v0 = vld [vmem:[#allocation2 + $0xfc4] sm:$0xff] }
 0x18e   :  { %1192 = vst [vmem:[#allocation7 + $0xc08] sm:$0xff] %v450_v1  ;;  %v521_v1 = vld [vmem:[#allocation5] sm:$0xff] }
 0x18f   :  { %1193 = vst [vmem:[#allocation7 + $0xc10] sm:$0xff] %v451_v2  ;;  %v514_v2 = vld [vmem:[#allocation2 + $0xfcc] sm:$0xff] }
 0x190   :  { %1194 = vst [vmem:[#allocation7 + $0xc18] sm:$0xff] %v452_v3  ;;  %v522_v3 = vld [vmem:[#allocation5 + $0x8] sm:$0xff] }
 0x191   :  { %1195 = vst [vmem:[#allocation7 + $0xc20] sm:$0xff] %v453_v4  ;;  %v515_v4 = vld [vmem:[#allocation2 + $0xfd4] sm:$0xff] }
 0x192   :  { %1196 = vst [vmem:[#allocation7 + $0xc28] sm:$0xff] %v454_v5  ;;  %v523_v5 = vld [vmem:[#allocation5 + $0x10] sm:$0xff] }
 0x193   :  { %1197 = vst [vmem:[#allocation7 + $0xc30] sm:$0xff] %v455_v6  ;;  %v516_v6 = vld [vmem:[#allocation2 + $0xfdc] sm:$0xff] }
 0x194   :  { %1198 = vst [vmem:[#allocation7 + $0xc38] sm:$0xff] %v456_v7  ;;  %v517_v7 = vld [vmem:[#allocation2 + $0xfe4] sm:$0xff] }
 0x195   :  { %1199 = vst [vmem:[#allocation7 + $0xc40] sm:$0xff] %v457_v8  ;;  %v636_v8 = vrot.slane %v521_v1, 4 }
 0x196   :  { %1200 = vst [vmem:[#allocation7 + $0xc48] sm:$0xff] %v458_v9  ;;  %v524_v9 = vld [vmem:[#allocation5 + $0x18] sm:$0xff] }
 0x197   :  { %1201 = vst [vmem:[#allocation7 + $0xc50] sm:$0xff] %v459_v10  ;;  %v520_v10 = vld [vmem:[#allocation2 + $0xffc] sm:$0xf] }
 0x198   :  { %1202 = vst [vmem:[#allocation7 + $0xc58] sm:$0xff] %v460_v11  ;;  %v637_v11 = vrot.slane %v522_v3, 4 }
 0x199   :  { %1203 = vst [vmem:[#allocation7 + $0xc60] sm:$0xff] %v461_v12  ;;  %v525_v12 = vld [vmem:[#allocation5 + $0x20] sm:$0xff] }
 0x19a   :  { %1204 = vst [vmem:[#allocation7 + $0xc68] sm:$0xff] %v462_v13  ;;  %v518_v13 = vld [vmem:[#allocation2 + $0xfec] sm:$0xff] }
 0x19b   :  { %1205 = vst [vmem:[#allocation7 + $0xc70] sm:$0xff] %v463_v14  ;;  %v639_v14 = vrot.slane %v523_v5, 4  ;;  %v544_v5 = vld [vmem:[#allocation5 + $0xb8] sm:$0xff] }
 0x19c   :  { %1206 = vst [vmem:[#allocation7 + $0xc78] sm:$0xff] %v464_v15  ;;  %v526_v15 = vld [vmem:[#allocation5 + $0x28] sm:$0xff] }
 0x19d   :  { %1207 = vst [vmem:[#allocation7 + $0xc80] sm:$0xff] %v465_v16  ;;  %v519_v16 = vld [vmem:[#allocation2 + $0xff4] sm:$0xff] }
 0x19e   :  { %1208 = vst [vmem:[#allocation7 + $0xc88] sm:$0xff] %v466_v17  ;;  %v641_v17 = vrot.slane %v524_v9, 4 }
 0x19f   :  { %1209 = vst [vmem:[#allocation7 + $0xc90] sm:$0xff] %v467_v18  ;;  %v527_v18 = vld [vmem:[#allocation5 + $0x30] sm:$0xff] }
 0x1a0   :  { %1210 = vst [vmem:[#allocation7 + $0xc98] sm:$0xff] %v468_v19  ;;  %v806_v19 = vsel %vm635_vm0, %v520_v10, %v636_v8 }
 0x1a1   :  { %1211 = vst [vmem:[#allocation7 + $0xca0] sm:$0xff] %v469_v20  ;;  %v643_v20 = vrot.slane %v525_v12, 4 }
 0x1a2   :  { %1212 = vst [vmem:[#allocation7 + $0xca8] sm:$0xff] %v470_v21  ;;  %v528_v21 = vld [vmem:[#allocation5 + $0x38] sm:$0xff] }
 0x1a3   :  { %1213 = vst [vmem:[#allocation7 + $0xcb0] sm:$0xff] %v471_v22  ;;  %v638_v22 = vsel %vm635_vm0, %v636_v8, %v637_v11  ;;  %v545_v8 = vld [vmem:[#allocation5 + $0xc0] sm:$0xff] }
 0x1a4   :  { %1214 = vst [vmem:[#allocation7 + $0xcb8] sm:$0xff] %v472_v23  ;;  %v645_v23 = vrot.slane %v526_v15, 4 }
 0x1a5   :  { %1215 = vst [vmem:[#allocation7 + $0xcc0] sm:$0xff] %v473_v24  ;;  %v529_v24 = vld [vmem:[#allocation5 + $0x40] sm:$0xff] }
 0x1a6   :  { %1216 = vst [vmem:[#allocation7 + $0xcc8] sm:$0xff] %v474_v25  ;;  %v640_v25 = vsel %vm635_vm0, %v637_v11, %v639_v14  ;;  %v546_v11 = vld [vmem:[#allocation5 + $0xc8] sm:$0xff] }
 0x1a7   :  { %1217 = vst [vmem:[#allocation7 + $0xcd0] sm:$0xff] %v475_v26  ;;  %v647_v26 = vrot.slane %v527_v18, 4 }
 0x1a8   :  { %1218 = vst [vmem:[#allocation7 + $0xcd8] sm:$0xff] %v476_v27  ;;  %v530_v27 = vld [vmem:[#allocation5 + $0x48] sm:$0xff] }
 0x1a9   :  { %1219 = vst [vmem:[#allocation7 + $0xce0] sm:$0xff] %v477_v28  ;;  %v642_v28 = vsel %vm635_vm0, %v639_v14, %v641_v17  ;;  %v547_v14 = vld [vmem:[#allocation5 + $0xd0] sm:$0xff] }
 0x1aa   :  { %1220 = vst [vmem:[#allocation7 + $0xce8] sm:$0xff] %v478_v29  ;;  %v649_v29 = vrot.slane %v528_v21, 4 }
 0x1ab   :  { %1221 = vst [vmem:[#allocation7 + $0xcf0] sm:$0xff] %v479_v30  ;;  %v531_v30 = vld [vmem:[#allocation5 + $0x50] sm:$0xff] }
 0x1ac   :  { %1222 = vst [vmem:[#allocation7 + $0xcf8] sm:$0xff] %v480_v31  ;;  %v644_v31 = vsel %vm635_vm0, %v641_v17, %v643_v20  ;;  %v548_v17 = vld [vmem:[#allocation5 + $0xd8] sm:$0xff] }
 0x1ad   :  { %1223 = vst [vmem:[#allocation7 + $0xd00] sm:$0xff] %v481_v32  ;;  %v651_v32 = vrot.slane %v529_v24, 4 }
 0x1ae   :  { %1224 = vst [vmem:[#allocation7 + $0xd08] sm:$0xff] %v482_v33  ;;  %v532_v33 = vld [vmem:[#allocation5 + $0x58] sm:$0xff] }
 0x1af   :  { %1225 = vst [vmem:[#allocation7 + $0xd10] sm:$0xff] %v483_v34  ;;  %v646_v34 = vsel %vm635_vm0, %v643_v20, %v645_v23  ;;  %v549_v20 = vld [vmem:[#allocation5 + $0xe0] sm:$0xff] }
 0x1b0   :  { %1226 = vst [vmem:[#allocation7 + $0xd18] sm:$0xff] %v484_v35  ;;  %v653_v35 = vrot.slane %v530_v27, 4 }
 0x1b1   :  { %1227 = vst [vmem:[#allocation7 + $0xd20] sm:$0xff] %v485_v36  ;;  %v533_v36 = vld [vmem:[#allocation5 + $0x60] sm:$0xff] }
 0x1b2   :  { %1228 = vst [vmem:[#allocation7 + $0xd28] sm:$0xff] %v486_v37  ;;  %v648_v37 = vsel %vm635_vm0, %v645_v23, %v647_v26  ;;  %v550_v23 = vld [vmem:[#allocation5 + $0xe8] sm:$0xff] }
 0x1b3   :  { %1229 = vst [vmem:[#allocation7 + $0xd30] sm:$0xff] %v487_v38  ;;  %v655_v38 = vrot.slane %v531_v30, 4 }
 0x1b4   :  { %1230 = vst [vmem:[#allocation7 + $0xd38] sm:$0xff] %v488_v39  ;;  %v534_v39 = vld [vmem:[#allocation5 + $0x68] sm:$0xff] }
 0x1b5   :  { %1231 = vst [vmem:[#allocation7 + $0xd40] sm:$0xff] %v489_v40  ;;  %v650_v40 = vsel %vm635_vm0, %v647_v26, %v649_v29  ;;  %v551_v26 = vld [vmem:[#allocation5 + $0xf0] sm:$0xff] }
 0x1b6   :  { %1232 = vst [vmem:[#allocation7 + $0xd48] sm:$0xff] %v490_v41  ;;  %v657_v41 = vrot.slane %v532_v33, 4 }
 0x1b7   :  { %1233 = vst [vmem:[#allocation7 + $0xd50] sm:$0xff] %v491_v42  ;;  %v535_v42 = vld [vmem:[#allocation5 + $0x70] sm:$0xff] }
 0x1b8   :  { %1234 = vst [vmem:[#allocation7 + $0xd58] sm:$0xff] %v492_v43  ;;  %v652_v43 = vsel %vm635_vm0, %v649_v29, %v651_v32  ;;  %v552_v29 = vld [vmem:[#allocation5 + $0xf8] sm:$0xff] }
 0x1b9   :  { %1235 = vst [vmem:[#allocation7 + $0xd60] sm:$0xff] %v493_v44  ;;  %v659_v44 = vrot.slane %v533_v36, 4 }
 0x1ba   :  { %1236 = vst [vmem:[#allocation7 + $0xd68] sm:$0xff] %v494_v45  ;;  %v536_v45 = vld [vmem:[#allocation5 + $0x78] sm:$0xff] }
 0x1bb   :  { %1237 = vst [vmem:[#allocation7 + $0xd70] sm:$0xff] %v495_v46  ;;  %v654_v46 = vsel %vm635_vm0, %v651_v32, %v653_v35  ;;  %v553_v32 = vld [vmem:[#allocation5 + $0x100] sm:$0xff] }
 0x1bc   :  { %1238 = vst [vmem:[#allocation7 + $0xd78] sm:$0xff] %v496_v47  ;;  %v661_v47 = vrot.slane %v534_v39, 4 }
 0x1bd   :  { %1239 = vst [vmem:[#allocation7 + $0xd80] sm:$0xff] %v497_v48  ;;  %v537_v48 = vld [vmem:[#allocation5 + $0x80] sm:$0xff] }
 0x1be   :  { %1240 = vst [vmem:[#allocation7 + $0xd88] sm:$0xff] %v498_v49  ;;  %v656_v49 = vsel %vm635_vm0, %v653_v35, %v655_v38  ;;  %v554_v35 = vld [vmem:[#allocation5 + $0x108] sm:$0xff] }
 0x1bf   :  { %1241 = vst [vmem:[#allocation7 + $0xd90] sm:$0xff] %v499_v50  ;;  %v663_v50 = vrot.slane %v535_v42, 4 }
 0x1c0   :  { %1242 = vst [vmem:[#allocation7 + $0xd98] sm:$0xff] %v500_v51  ;;  %v538_v51 = vld [vmem:[#allocation5 + $0x88] sm:$0xff] }
 0x1c1   :  { %1243 = vst [vmem:[#allocation7 + $0xda0] sm:$0xff] %v501_v52  ;;  %v658_v52 = vsel %vm635_vm0, %v655_v38, %v657_v41  ;;  %v555_v38 = vld [vmem:[#allocation5 + $0x110] sm:$0xff] }
 0x1c2   :  { %1244 = vst [vmem:[#allocation7 + $0xda8] sm:$0xff] %v502_v53  ;;  %v665_v53 = vrot.slane %v536_v45, 4 }
 0x1c3   :  { %1245 = vst [vmem:[#allocation7 + $0xdb0] sm:$0xff] %v503_v54  ;;  %v539_v54 = vld [vmem:[#allocation5 + $0x90] sm:$0xff] }
 0x1c4   :  { %1246 = vst [vmem:[#allocation7 + $0xdb8] sm:$0xff] %v504_v55  ;;  %v660_v55 = vsel %vm635_vm0, %v657_v41, %v659_v44  ;;  %v556_v41 = vld [vmem:[#allocation5 + $0x118] sm:$0xff] }
 0x1c5   :  { %1247 = vst [vmem:[#allocation7 + $0xdc0] sm:$0xff] %v505_v56  ;;  %v667_v56 = vrot.slane %v537_v48, 4 }
 0x1c6   :  { %1248 = vst [vmem:[#allocation7 + $0xdc8] sm:$0xff] %v506_v57  ;;  %v540_v57 = vld [vmem:[#allocation5 + $0x98] sm:$0xff] }
 0x1c7   :  { %1249 = vst [vmem:[#allocation7 + $0xdd0] sm:$0xff] %v507_v58  ;;  %v662_v58 = vsel %vm635_vm0, %v659_v44, %v661_v47  ;;  %v673_v1 = vrot.slane %v540_v57, 4  ;;  %v668_v3 = vsel %vm635_vm0, %v665_v53, %v667_v56  ;;  %v557_v44 = vld [vmem:[#allocation5 + $0x120] sm:$0xff] }
 0x1c8   :  { %1250 = vst [vmem:[#allocation7 + $0xdd8] sm:$0xff] %v508_v59  ;;  %v669_v59 = vrot.slane %v538_v51, 4 }
 0x1c9   :  { %1251 = vst [vmem:[#allocation7 + $0xde0] sm:$0xff] %v509_v60  ;;  %v541_v60 = vld [vmem:[#allocation5 + $0xa0] sm:$0xff] }
 0x1ca   :  { %1252 = vst [vmem:[#allocation7 + $0xde8] sm:$0xff] %v510_v61  ;;  %v664_v61 = vsel %vm635_vm0, %v661_v47, %v663_v50  ;;  %v558_v47 = vld [vmem:[#allocation5 + $0x128] sm:$0xff] }
 0x1cb   :  { %1253 = vst [vmem:[#allocation7 + $0xdf0] sm:$0xff] %v511_v62  ;;  %v671_v62 = vrot.slane %v539_v54, 4 }
 0x1cc   :  { %1254 = vst [vmem:[#allocation7 + $0xdf8] sm:$0xff] %v512_v63  ;;  %v542_v63 = vld [vmem:[#allocation5 + $0xa8] sm:$0xff] }
 0x1cd   :  { %1255 = vst [vmem:[#allocation7 + $0xe00] sm:$0xff] %v513_v0  ;;  %v666_v0 = vsel %vm635_vm0, %v663_v50, %v665_v53  ;;  %v672_v9 = vsel %vm635_vm0, %v669_v59, %v671_v62  ;;  %v674_v12 = vsel %vm635_vm0, %v671_v62, %v673_v1  ;;  %v559_v50 = vld [vmem:[#allocation5 + $0x130] sm:$0xff]  ;;  %v560_v53 = vld [vmem:[#allocation5 + $0x138] sm:$0xff] }
 0x1ce   :  { %1256 = vst [vmem:[#allocation7 + $0xe08] sm:$0xff] %v514_v2  ;;  %v543_v2 = vld [vmem:[#allocation5 + $0xb0] sm:$0xff] }
 0x1cf   :  { %1257 = vst [vmem:[#allocation7 + $0xe10] sm:$0xff] %v515_v4  ;;  %v675_v4 = vrot.slane %v541_v60, 4  ;;  %v679_v10 = vrot.slane %v543_v2, 4  ;;  %v563_v62 = vld [vmem:[#allocation5 + $0x150] sm:$0xff] }
 0x1d0   :  { %1258 = vst [vmem:[#allocation7 + $0xe18] sm:$0xff] %v516_v6  ;;  %v670_v6 = vsel %vm635_vm0, %v667_v56, %v669_v59  ;;  %v561_v56 = vld [vmem:[#allocation5 + $0x140] sm:$0xff]  ;;  %v562_v59 = vld [vmem:[#allocation5 + $0x148] sm:$0xff] }
 0x1d1   :  { %1259 = vst [vmem:[#allocation7 + $0xe20] sm:$0xff] %v517_v7  ;;  %v677_v7 = vrot.slane %v542_v63, 4  ;;  %v676_v15 = vsel %vm635_vm0, %v673_v1, %v675_v4  ;;  %v564_v1 = vld [vmem:[#allocation5 + $0x158] sm:$0xff] }
 0x1d2   :  { %1260 = vst [vmem:[#allocation7 + $0xe28] sm:$0xff] %v518_v13  ;;  %v681_v13 = vrot.slane %v544_v5, 4 }
 0x1d3   :  { %1261 = vst [vmem:[#allocation7 + $0xe30] sm:$0xff] %v519_v16  ;;  %v683_v16 = vrot.slane %v545_v8, 4  ;;  %v678_v18 = vsel %vm635_vm0, %v675_v4, %v677_v7  ;;  %v680_v21 = vsel %vm635_vm0, %v677_v7, %v679_v10  ;;  %v565_v4 = vld [vmem:[#allocation5 + $0x160] sm:$0xff]  ;;  %v566_v7 = vld [vmem:[#allocation5 + $0x168] sm:$0xff] }
 0x1d4   :  { %1262 = vst [vmem:[#allocation7 + $0xe38] sm:$0xff] %v806_v19  ;;  %v685_v19 = vrot.slane %v546_v11, 4  ;;  %v682_v24 = vsel %vm635_vm0, %v679_v10, %v681_v13  ;;  %v567_v10 = vld [vmem:[#allocation5 + $0x170] sm:$0xff] }
 0x1d5   :  { %1263 = vst [vmem:[#allocation7 + $0xe40] sm:$0xff] %v638_v22  ;;  %v687_v22 = vrot.slane %v547_v14, 4  ;;  %v684_v27 = vsel %vm635_vm0, %v681_v13, %v683_v16  ;;  %v568_v13 = vld [vmem:[#allocation5 + $0x178] sm:$0xff] }
 0x1d6   :  { %1264 = vst [vmem:[#allocation7 + $0xe48] sm:$0xff] %v640_v25  ;;  %v689_v25 = vrot.slane %v548_v17, 4  ;;  %v686_v30 = vsel %vm635_vm0, %v683_v16, %v685_v19  ;;  %v569_v16 = vld [vmem:[#allocation5 + $0x180] sm:$0xff] }
 0x1d7   :  { %1265 = vst [vmem:[#allocation7 + $0xe50] sm:$0xff] %v642_v28  ;;  %v691_v28 = vrot.slane %v549_v20, 4  ;;  %v688_v33 = vsel %vm635_vm0, %v685_v19, %v687_v22  ;;  %v570_v19 = vld [vmem:[#allocation5 + $0x188] sm:$0xff] }
 0x1d8   :  { %1266 = vst [vmem:[#allocation7 + $0xe58] sm:$0xff] %v644_v31  ;;  %v693_v31 = vrot.slane %v550_v23, 4  ;;  %v690_v36 = vsel %vm635_vm0, %v687_v22, %v689_v25  ;;  %v571_v22 = vld [vmem:[#allocation5 + $0x190] sm:$0xff] }
 0x1d9   :  { %1267 = vst [vmem:[#allocation7 + $0xe60] sm:$0xff] %v646_v34  ;;  %v695_v34 = vrot.slane %v551_v26, 4  ;;  %v692_v39 = vsel %vm635_vm0, %v689_v25, %v691_v28  ;;  %v572_v25 = vld [vmem:[#allocation5 + $0x198] sm:$0xff] }
 0x1da   :  { %1268 = vst [vmem:[#allocation7 + $0xe68] sm:$0xff] %v648_v37  ;;  %v697_v37 = vrot.slane %v552_v29, 4  ;;  %v694_v42 = vsel %vm635_vm0, %v691_v28, %v693_v31  ;;  %v573_v28 = vld [vmem:[#allocation5 + $0x1a0] sm:$0xff] }
 0x1db   :  { %1269 = vst [vmem:[#allocation7 + $0xe70] sm:$0xff] %v650_v40  ;;  %v699_v40 = vrot.slane %v553_v32, 4  ;;  %v696_v45 = vsel %vm635_vm0, %v693_v31, %v695_v34  ;;  %v574_v31 = vld [vmem:[#allocation5 + $0x1a8] sm:$0xff] }
 0x1dc   :  { %1270 = vst [vmem:[#allocation7 + $0xe78] sm:$0xff] %v652_v43  ;;  %v701_v43 = vrot.slane %v554_v35, 4  ;;  %v698_v48 = vsel %vm635_vm0, %v695_v34, %v697_v37  ;;  %v575_v34 = vld [vmem:[#allocation5 + $0x1b0] sm:$0xff] }
 0x1dd   :  { %1271 = vst [vmem:[#allocation7 + $0xe80] sm:$0xff] %v654_v46  ;;  %v703_v46 = vrot.slane %v555_v38, 4  ;;  %v700_v51 = vsel %vm635_vm0, %v697_v37, %v699_v40  ;;  %v576_v37 = vld [vmem:[#allocation5 + $0x1b8] sm:$0xff] }
 0x1de   :  { %1272 = vst [vmem:[#allocation7 + $0xe88] sm:$0xff] %v656_v49  ;;  %v705_v49 = vrot.slane %v556_v41, 4  ;;  %v702_v54 = vsel %vm635_vm0, %v699_v40, %v701_v43  ;;  %v577_v40 = vld [vmem:[#allocation5 + $0x1c0] sm:$0xf] }
 0x1df   :  { %1273 = vst [vmem:[#allocation7 + $0xe90] sm:$0xff] %v658_v52  ;;  %v707_v52 = vrot.slane %v557_v44, 4  ;;  %v704_v57 = vsel %vm635_vm0, %v701_v43, %v703_v46  ;;  %v745_v44 = vrot.slane %v576_v37, 4 }
 0x1e0   :  { %1274 = vst [vmem:[#allocation7 + $0xe98] sm:$0xff] %v660_v55  ;;  %v709_v55 = vrot.slane %v558_v47, 4  ;;  %v706_v60 = vsel %vm635_vm0, %v703_v46, %v705_v49  ;;  %v747_v46 = vrot.slane %v577_v40, 4 }
 0x1e1   :  { %1275 = vst [vmem:[#allocation7 + $0xea0] sm:$0xff] %v662_v58  ;;  %v711_v58 = vrot.slane %v559_v50, 4  ;;  %v708_v63 = vsel %vm635_vm0, %v705_v49, %v707_v52 }
 0x1e2   :  { %1276 = vst [vmem:[#allocation7 + $0xea8] sm:$0xff] %v664_v61  ;;  %v713_v61 = vrot.slane %v560_v53, 4  ;;  %v710_v2 = vsel %vm635_vm0, %v707_v52, %v709_v55  ;;  %v748_v50 = vsel %vm635_vm0, %v745_v44, %v747_v46 }
 0x1e3   :  { %1277 = vst [vmem:[#allocation7 + $0xeb0] sm:$0xff] %v666_v0  ;;  %v715_v0 = vrot.slane %v561_v56, 4  ;;  %v712_v5 = vsel %vm635_vm0, %v709_v55, %v711_v58 }
 0x1e4   :  { %1278 = vst [vmem:[#allocation7 + $0xeb8] sm:$0xff] %v668_v3  ;;  %v717_v3 = vrot.slane %v562_v59, 4  ;;  %v714_v8 = vsel %vm635_vm0, %v711_v58, %v713_v61 }
 0x1e5   :  { %1279 = vst [vmem:[#allocation7 + $0xec0] sm:$0xff] %v670_v6  ;;  %v719_v6 = vrot.slane %v563_v62, 4  ;;  %v716_v11 = vsel %vm635_vm0, %v713_v61, %v715_v0 }
 0x1e6   :  { %1280 = vst [vmem:[#allocation7 + $0xec8] sm:$0xff] %v672_v9  ;;  %v721_v9 = vrot.slane %v564_v1, 4  ;;  %v718_v14 = vsel %vm635_vm0, %v715_v0, %v717_v3 }
 0x1e7   :  { %1281 = vst [vmem:[#allocation7 + $0xed0] sm:$0xff] %v674_v12  ;;  %v723_v12 = vrot.slane %v565_v4, 4  ;;  %v720_v17 = vsel %vm635_vm0, %v717_v3, %v719_v6 }
 0x1e8   :  { %1282 = vst [vmem:[#allocation7 + $0xed8] sm:$0xff] %v676_v15  ;;  %v725_v15 = vrot.slane %v566_v7, 4  ;;  %v722_v20 = vsel %vm635_vm0, %v719_v6, %v721_v9 }
 0x1e9   :  { %1283 = vst [vmem:[#allocation7 + $0xee0] sm:$0xff] %v678_v18  ;;  %v727_v18 = vrot.slane %v567_v10, 4  ;;  %v724_v23 = vsel %vm635_vm0, %v721_v9, %v723_v12 }
 0x1ea   :  { %1284 = vst [vmem:[#allocation7 + $0xee8] sm:$0xff] %v680_v21  ;;  %v729_v21 = vrot.slane %v568_v13, 4  ;;  %v726_v26 = vsel %vm635_vm0, %v723_v12, %v725_v15 }
 0x1eb   :  { %1285 = vst [vmem:[#allocation7 + $0xef0] sm:$0xff] %v682_v24  ;;  %v731_v24 = vrot.slane %v569_v16, 4  ;;  %v728_v29 = vsel %vm635_vm0, %v725_v15, %v727_v18 }
 0x1ec   :  { %1286 = vst [vmem:[#allocation7 + $0xef8] sm:$0xff] %v684_v27  ;;  %v733_v27 = vrot.slane %v570_v19, 4  ;;  %v730_v32 = vsel %vm635_vm0, %v727_v18, %v729_v21 }
 0x1ed   :  { %1287 = vst [vmem:[#allocation7 + $0xf00] sm:$0xff] %v686_v30  ;;  %v735_v30 = vrot.slane %v571_v22, 4  ;;  %v732_v35 = vsel %vm635_vm0, %v729_v21, %v731_v24 }
 0x1ee   :  { %1288 = vst [vmem:[#allocation7 + $0xf08] sm:$0xff] %v688_v33  ;;  %v737_v33 = vrot.slane %v572_v25, 4  ;;  %v734_v38 = vsel %vm635_vm0, %v731_v24, %v733_v27 }
 0x1ef   :  { %1289 = vst [vmem:[#allocation7 + $0xf10] sm:$0xff] %v690_v36  ;;  %v739_v36 = vrot.slane %v573_v28, 4  ;;  %v736_v41 = vsel %vm635_vm0, %v733_v27, %v735_v30 }
 0x1f0   :  { %1290 = vst [vmem:[#allocation7 + $0xf18] sm:$0xff] %v692_v39  ;;  %v741_v39 = vrot.slane %v574_v31, 4  ;;  %v738_v43 = vsel %vm635_vm0, %v735_v30, %v737_v33 }
 0x1f1   :  { %1291 = vst [vmem:[#allocation7 + $0xf20] sm:$0xff] %v694_v42  ;;  %v743_v42 = vrot.slane %v575_v34, 4 }
 0x1f2   :  { %1292 = vst [vmem:[#allocation7 + $0xf28] sm:$0xff] %v696_v45  ;;  %v740_v45 = vsel %vm635_vm0, %v737_v33, %v739_v36  ;;  %v742_v47 = vsel %vm635_vm0, %v739_v36, %v741_v39 }
 0x1f3   :  { %1293 = vst [vmem:[#allocation7 + $0xf30] sm:$0xff] %v698_v48  ;;  %v744_v48 = vsel %vm635_vm0, %v741_v39, %v743_v42  ;;  %v746_v49 = vsel %vm635_vm0, %v743_v42, %v745_v44 }
 0x1f4   :  { %1294 = vst [vmem:[#allocation7 + $0xf38] sm:$0xff] %v700_v51 }
 0x1f5   :  { %1295 = vst [vmem:[#allocation7 + $0xf40] sm:$0xff] %v702_v54 }
 0x1f6   :  { %1296 = vst [vmem:[#allocation7 + $0xf48] sm:$0xff] %v704_v57 }
 0x1f7   :  { %1297 = vst [vmem:[#allocation7 + $0xf50] sm:$0xff] %v706_v60 }
 0x1f8   :  { %1298 = vst [vmem:[#allocation7 + $0xf58] sm:$0xff] %v708_v63 }
 0x1f9   :  { %1299 = vst [vmem:[#allocation7 + $0xf60] sm:$0xff] %v710_v2 }
 0x1fa   :  { %1300 = vst [vmem:[#allocation7 + $0xf68] sm:$0xff] %v712_v5 }
 0x1fb   :  { %1301 = vst [vmem:[#allocation7 + $0xf70] sm:$0xff] %v714_v8 }
 0x1fc   :  { %1302 = vst [vmem:[#allocation7 + $0xf78] sm:$0xff] %v716_v11 }
 0x1fd   :  { %1303 = vst [vmem:[#allocation7 + $0xf80] sm:$0xff] %v718_v14 }
 0x1fe   :  { %1304 = vst [vmem:[#allocation7 + $0xf88] sm:$0xff] %v720_v17 }
 0x1ff   :  { %1305 = vst [vmem:[#allocation7 + $0xf90] sm:$0xff] %v722_v20 }
 0x200   :  { %1306 = vst [vmem:[#allocation7 + $0xf98] sm:$0xff] %v724_v23 }
 0x201   :  { %1307 = vst [vmem:[#allocation7 + $0xfa0] sm:$0xff] %v726_v26 }
 0x202   :  { %1308 = vst [vmem:[#allocation7 + $0xfa8] sm:$0xff] %v728_v29 }
 0x203   :  { %1309 = vst [vmem:[#allocation7 + $0xfb0] sm:$0xff] %v730_v32 }
 0x204   :  { %1310 = vst [vmem:[#allocation7 + $0xfb8] sm:$0xff] %v732_v35 }
 0x205   :  { %1311 = vst [vmem:[#allocation7 + $0xfc0] sm:$0xff] %v734_v38 }
 0x206   :  { %1312 = vst [vmem:[#allocation7 + $0xfc8] sm:$0xff] %v736_v41 }
 0x207   :  { %1313 = vst [vmem:[#allocation7 + $0xfd0] sm:$0xff] %v738_v43 }
 0x208   :  { %1314 = vst [vmem:[#allocation7 + $0xfd8] sm:$0xff] %v740_v45 }
 0x209   :  { %1315 = vst [vmem:[#allocation7 + $0xfe0] sm:$0xff] %v742_v47 }
 0x20a   :  { %1316 = vst [vmem:[#allocation7 + $0xfe8] sm:$0xff] %v744_v48 }
 0x20b   :  { %1317 = vst [vmem:[#allocation7 + $0xff0] sm:$0xff] %v746_v49 }
 0x20c   :  { %1318 = vst [vmem:[#allocation7 + $0xff8] sm:$0xff] %v748_v50 }
 0x20d   :  { %1331 = dma.vmem_to_hbm [thread:$0]  %s1324_s1, 65536, %s1326_s24, [#allocation4], %s1425_s14, %s1425_s14, %s1426_s15  }
 0x20e   :  { %1422 = dma.done.wait [#allocation4], 65536  }
 0x20f   :  { %1423 = vsyncadd [#allocation4], 4294901760 }
 0x210   :  { %1336 = vsyncpa [#allocation3], 1 }
 0x211   :  { %1337 = vsyncpa [#allocation6], 1 }
 0x212   :  { %1338 = vsyncpa [#allocation4], 1 }

</bundles_post_ra>
